<compile_context>
chip_gen: v7x
topology: tpu7x:2x2x1
jax: 0.10.0
libtpu: 0.0.40
codegen_flags: <defaults>
</compile_context>

<pallas_src>
import jax
import jax.numpy as jnp
from jax.experimental import pallas as pl
from jax.experimental.pallas import tpu as pltpu

# Small, module-consistent sizes (relation_dim + embedding_dim feeds the LSTM).
RELATION_DIM = 16
EMBED_DIM = 32
HIDDEN_DIM = 32
NLAYERS = 2
VOCAB = 64
VOCAB_PAD = 128          # lane-dense decoder output width (sliced back to VOCAB)
NUM_RELATIONS = 12
SEQ = 8
D_IN = RELATION_DIM + EMBED_DIM


def tree_decoder_kernel(x_ref, h0_ref, c0_ref,
                        w_ih0_ref, w_hh0_ref, b0_ref,
                        w_ih1_ref, w_hh1_ref, b1_ref,
                        w_dec_ref, b_dec_ref,
                        logits_ref, h_out_ref, c_out_ref):
    """relu + 2-layer LSTM (unrolled, wavefronted) + lane-dense decoder matmul."""
    H = HIDDEN_DIM
    T = x_ref.shape[0]
    bf = jnp.bfloat16

    # --- Hoisted, batched layer-0 input projection (bias folded in). ---------
    # relu once over the whole sequence, then a single (T, D_IN)@(D_IN, 4H)
    # MXU matmul instead of T tiny M=1 matmuls inside the recurrence.
    x_relu = jnp.maximum(x_ref[...], 0.0)
    gx0 = (jnp.dot(x_relu.astype(bf), w_ih0_ref[...],
                   preferred_element_type=jnp.float32)
           + b0_ref[...])                                    # (T, 4H) f32

    w_hh0 = w_hh0_ref[...]        # (H, 4H)  bf16
    w_ih1 = w_ih1_ref[...]        # (H, 4H)  bf16
    w_hh1 = w_hh1_ref[...]        # (H, 4H)  bf16
    b1 = b1_ref[...]              # (1, 4H)  f32

    # Per-layer initial states; kept in registers (f32) for the whole sequence,
    # with a bf16 shadow copy feeding the MXU.
    h0 = h0_ref[0:1, :]
    c0 = c0_ref[0:1, :]
    h1 = h0_ref[1:2, :]
    c1 = c0_ref[1:2, :]
    h0_bf = h0.astype(bf)
    h1_bf = h1.astype(bf)

    def lstm_cell(gates, c_prev):
        # Lane-dense nonlinearities: one sigmoid + one tanh over the full
        # (1, 4H) gates vector, then static lane slices (PyTorch order i,f,g,o).
        sig = jax.nn.sigmoid(gates)
        th = jnp.tanh(gates)
        i_g = sig[:, 0 * H:1 * H]
        f_g = sig[:, 1 * H:2 * H]
        g_g = th[:, 2 * H:3 * H]
        o_g = sig[:, 3 * H:4 * H]
        c_new = f_g * c_prev + i_g * g_g
        h_new = o_g * jnp.tanh(c_new)
        return h_new, c_new

    # Layer-1 recurrent term for step 0: depends only on the initial h1, so it
    # sits entirely off the layer-0 critical path (bias folded in).
    rec1 = jnp.dot(h1_bf, w_hh1, preferred_element_type=jnp.float32) + b1

    # --- Fully unrolled, wavefronted recurrence over T=8 steps. --------------
    y1_rows = []
    for t in range(T):
        # Layer 0: gates = GX0[t] + h0 @ W_hh0   (one M=1, K=H matmul per step)
        gates0 = gx0[t:t + 1, :] + jnp.dot(h0_bf, w_hh0,
                                           preferred_element_type=jnp.float32)
        h0, c0 = lstm_cell(gates0, c0)
        h0_bf = h0.astype(bf)

        # TODO(synk): inter-layer dropout(p=0.5) is training-only; eval path is identity.
        # Layer 1: only the h0-dependent half (K=H matmul) is on the critical
        # path; the h1 @ W_hh1 + b1 term was precomputed as `rec1`.
        gates1 = jnp.dot(h0_bf, w_ih1, preferred_element_type=jnp.float32) + rec1
        h1, c1 = lstm_cell(gates1, c1)
        h1_bf = h1.astype(bf)
        y1_rows.append(h1_bf)

        # Next step's layer-1 recurrent term: independent of layer-0 step t+1,
        # so it overlaps with the next layer-0 matmul.
        if t + 1 < T:
            rec1 = jnp.dot(h1_bf, w_hh1, preferred_element_type=jnp.float32) + b1

    # Final hidden/cell states: single dense stores instead of per-layer writes.
    h_out_ref[...] = jnp.concatenate([h0, h1], axis=0)
    c_out_ref[...] = jnp.concatenate([c0, c1], axis=0)

    # Decoder over the whole sequence; y1 never round-trips through VMEM and
    # the output tile is 128 lanes wide (unmasked full-lane stores).
    y1 = jnp.concatenate(y1_rows, axis=0)                    # (T, H) bf16
    logits_ref[...] = (jnp.dot(y1, w_dec_ref[...],
                               preferred_element_type=jnp.float32)
                       + b_dec_ref[...])


@jax.jit
def tree_decoder_forward(params, input_ids, hidden, word):
    """JAX glue: embedding gather + concat + weight packing, then the Pallas kernel."""
    rel = jnp.take(params["relation_emb"], input_ids, axis=0)         # (T, rel_dim)
    word2d = word.reshape(-1, EMBED_DIM)                              # (T, emb_dim)
    x = jnp.concatenate([rel, word2d], axis=1).astype(jnp.float32)    # (T, D_IN)

    h0, c0 = hidden
    h0_2d = h0.reshape(NLAYERS, HIDDEN_DIM).astype(jnp.float32)
    c0_2d = c0.reshape(NLAYERS, HIDDEN_DIM).astype(jnp.float32)

    # bf16 MXU operands (accumulation stays f32 inside the kernel).
    bf = jnp.bfloat16
    w_ih0 = params["w_ih0"].astype(bf)
    w_hh0 = params["w_hh0"].astype(bf)
    w_ih1 = params["w_ih1"].astype(bf)
    w_hh1 = params["w_hh1"].astype(bf)
    # Pad decoder to a lane-dense (H, 128) output; sliced back to VOCAB below.
    w_dec = jnp.pad(params["w_dec"], ((0, 0), (0, VOCAB_PAD - VOCAB))).astype(bf)
    b_dec = jnp.pad(params["b_dec"], ((0, 0), (0, VOCAB_PAD - VOCAB)))

    T = x.shape[0]
    out_shapes = (
        jax.ShapeDtypeStruct((T, VOCAB_PAD), jnp.float32),            # padded logits
        jax.ShapeDtypeStruct((NLAYERS, HIDDEN_DIM), jnp.float32),     # h_n
        jax.ShapeDtypeStruct((NLAYERS, HIDDEN_DIM), jnp.float32),     # c_n
    )
    vmem = pl.BlockSpec(memory_space=pltpu.MemorySpace.VMEM)

    logits_pad, h_n, c_n = pl.pallas_call(
        tree_decoder_kernel,
        out_shape=out_shapes,
        in_specs=[vmem] * 11,
        out_specs=(vmem, vmem, vmem),
    )(x, h0_2d, c0_2d,
      w_ih0, w_hh0, params["b0"],
      w_ih1, w_hh1, params["b1"],
      w_dec, b_dec)

    logits = logits_pad[:, :VOCAB]
    # Restore PyTorch hidden layout (nlayers, batch=1, hidden).
    return logits, (h_n.reshape(NLAYERS, 1, HIDDEN_DIM),
                    c_n.reshape(NLAYERS, 1, HIDDEN_DIM))


def reference_forward(params, input_ids, hidden, word):
    """Pure-JAX f32 reference (mirrors the PyTorch forward exactly)."""
    H = HIDDEN_DIM
    rel = params["relation_emb"][input_ids]
    x = jnp.concatenate([rel, word.reshape(-1, EMBED_DIM)], axis=1)
    x = jnp.maximum(x, 0.0)
    h0, c0 = hidden

    def layer(xs, w_ih, w_hh, b, h, c):
        outs = []
        for t in range(xs.shape[0]):
            g = xs[t:t + 1] @ w_ih + h @ w_hh + b
            i = jax.nn.sigmoid(g[:, :H])
            f = jax.nn.sigmoid(g[:, H:2 * H])
            gg = jnp.tanh(g[:, 2 * H:3 * H])
            o = jax.nn.sigmoid(g[:, 3 * H:])
            c = f * c + i * gg
            h = o * jnp.tanh(c)
            outs.append(h)
        return jnp.concatenate(outs, 0), h, c

    y0, h0f, c0f = layer(x, params["w_ih0"], params["w_hh0"], params["b0"],
                         h0[0].reshape(1, H), c0[0].reshape(1, H))
    y1, h1f, c1f = layer(y0, params["w_ih1"], params["w_hh1"], params["b1"],
                         h0[1].reshape(1, H), c0[1].reshape(1, H))
    logits = y1 @ params["w_dec"] + params["b_dec"]
    return logits, (jnp.stack([h0f, h1f]), jnp.stack([c0f, c1f]))


def make_params(key):
    ks = jax.random.split(key, 10)
    s = 1.0 / jnp.sqrt(HIDDEN_DIM)  # PyTorch LSTM default init range
    u = lambda k, shape, lim: jax.random.uniform(k, shape, jnp.float32, -lim, lim)
    return {
        # nn.Embedding-style relation embedding table (passed into the module).
        "relation_emb": jax.random.normal(ks[0], (NUM_RELATIONS, RELATION_DIM),
                                          jnp.float32),
        # LSTM weights stored transposed: (in_features, 4*H) so kernel does x @ W.
        "w_ih0": u(ks[1], (D_IN, 4 * HIDDEN_DIM), s),
        "w_hh0": u(ks[2], (HIDDEN_DIM, 4 * HIDDEN_DIM), s),
        "b0":    u(ks[3], (1, 4 * HIDDEN_DIM), s),   # b_ih + b_hh folded together
        "w_ih1": u(ks[4], (HIDDEN_DIM, 4 * HIDDEN_DIM), s),
        "w_hh1": u(ks[5], (HIDDEN_DIM, 4 * HIDDEN_DIM), s),
        "b1":    u(ks[6], (1, 4 * HIDDEN_DIM), s),
        # decoder: weight uniform(-0.1, 0.1), bias zero (as in __init__).
        "w_dec": u(ks[7], (HIDDEN_DIM, VOCAB), 0.1),
        "b_dec": jnp.zeros((1, VOCAB), jnp.float32),
    }


if __name__ == "__main__":
    root = jax.random.PRNGKey(0)
    k_par, k_ids, k_word, k_h, k_c = jax.random.split(root, 5)

    params = make_params(k_par)
    input_ids = jax.random.randint(k_ids, (SEQ,), 0, NUM_RELATIONS)
    word = jax.random.normal(k_word, (SEQ, EMBED_DIM), jnp.float32)
    h0 = 0.1 * jax.random.normal(k_h, (NLAYERS, 1, HIDDEN_DIM), jnp.float32)
    c0 = 0.1 * jax.random.normal(k_c, (NLAYERS, 1, HIDDEN_DIM), jnp.float32)

    logits, (h_n, c_n) = tree_decoder_forward(params, input_ids, (h0, c0), word)
    jax.block_until_ready((logits, h_n, c_n))

    # Correctness check against a pure-JAX f32 reference. Tolerance accounts for
    # bf16 MXU operands (f32 accumulation) in the kernel.
    ref_logits, (ref_h, ref_c) = reference_forward(params, input_ids, (h0, c0), word)
    assert logits.shape == (SEQ, VOCAB)
    assert h_n.shape == (NLAYERS, 1, HIDDEN_DIM) and c_n.shape == (NLAYERS, 1, HIDDEN_DIM)
    tol = dict(atol=1e-2, rtol=1e-2)
    assert jnp.allclose(logits, ref_logits, **tol)
    assert jnp.allclose(h_n.reshape(NLAYERS, HIDDEN_DIM),
                        ref_h.reshape(NLAYERS, HIDDEN_DIM), **tol)
    assert jnp.allclose(c_n.reshape(NLAYERS, HIDDEN_DIM),
                        ref_c.reshape(NLAYERS, HIDDEN_DIM), **tol)

    print("KERNEL_OK")
</pallas_src>

<mosaic_0001>
module attributes {stable_mosaic.version = 11 : i64} {
  func.func @tree_decoder_kernel(%arg0: memref<8x48xf32, #tpu.memory_space<vmem>>, %arg1: memref<2x32xf32, #tpu.memory_space<vmem>>, %arg2: memref<2x32xf32, #tpu.memory_space<vmem>>, %arg3: memref<48x128xbf16, #tpu.memory_space<vmem>>, %arg4: memref<32x128xbf16, #tpu.memory_space<vmem>>, %arg5: memref<1x128xf32, #tpu.memory_space<vmem>>, %arg6: memref<32x128xbf16, #tpu.memory_space<vmem>>, %arg7: memref<32x128xbf16, #tpu.memory_space<vmem>>, %arg8: memref<1x128xf32, #tpu.memory_space<vmem>>, %arg9: memref<32x128xbf16, #tpu.memory_space<vmem>>, %arg10: memref<1x128xf32, #tpu.memory_space<vmem>>, %arg11: memref<8x128xf32, #tpu.memory_space<vmem>>, %arg12: memref<2x32xf32, #tpu.memory_space<vmem>>, %arg13: memref<2x32xf32, #tpu.memory_space<vmem>>) attributes {dimension_semantics = [], scalar_prefetch = 0 : i64, scratch_operands = 0 : i64, tpu.core_type = #tpu.core_type<tc>} {
    %c0 = arith.constant 0 : index
    %c0_0 = arith.constant 0 : index
    %0 = vector.load %arg0[%c0, %c0_0] : memref<8x48xf32, #tpu.memory_space<vmem>>, vector<8x48xf32>
    %cst = arith.constant 0.000000e+00 : f32
    %1 = vector.broadcast %cst : f32 to vector<8x48xf32>
    %2 = arith.maximumf %0, %1 : vector<8x48xf32>
    %3 = arith.truncf %2 : vector<8x48xf32> to vector<8x48xbf16>
    %c0_1 = arith.constant 0 : index
    %c0_2 = arith.constant 0 : index
    %4 = vector.load %arg3[%c0_1, %c0_2] : memref<48x128xbf16, #tpu.memory_space<vmem>>, vector<48x128xbf16>
    %cst_3 = arith.constant dense<0.000000e+00> : vector<8x128xf32>
    %5 = tpu.matmul %3, %4, %cst_3 {dimension_numbers = #tpu.dot_dimension_numbers<[1], [0], [0], [1], [0, 0, 1, 1], [], []>} : vector<8x48xbf16>, vector<48x128xbf16>, vector<8x128xf32> -> vector<8x128xf32>
    %c0_4 = arith.constant 0 : index
    %c0_5 = arith.constant 0 : index
    %6 = vector.load %arg5[%c0_4, %c0_5] : memref<1x128xf32, #tpu.memory_space<vmem>>, vector<1x128xf32>
    %7 = vector.broadcast %6 : vector<1x128xf32> to vector<8x128xf32>
    %8 = arith.addf %5, %7 : vector<8x128xf32>
    %c0_6 = arith.constant 0 : index
    %c0_7 = arith.constant 0 : index
    %9 = vector.load %arg4[%c0_6, %c0_7] : memref<32x128xbf16, #tpu.memory_space<vmem>>, vector<32x128xbf16>
    %c0_8 = arith.constant 0 : index
    %c0_9 = arith.constant 0 : index
    %10 = vector.load %arg6[%c0_8, %c0_9] : memref<32x128xbf16, #tpu.memory_space<vmem>>, vector<32x128xbf16>
    %c0_10 = arith.constant 0 : index
    %c0_11 = arith.constant 0 : index
    %11 = vector.load %arg7[%c0_10, %c0_11] : memref<32x128xbf16, #tpu.memory_space<vmem>>, vector<32x128xbf16>
    %c0_12 = arith.constant 0 : index
    %c0_13 = arith.constant 0 : index
    %12 = vector.load %arg8[%c0_12, %c0_13] : memref<1x128xf32, #tpu.memory_space<vmem>>, vector<1x128xf32>
    %c0_14 = arith.constant 0 : index
    %c0_15 = arith.constant 0 : index
    %13 = vector.load %arg1[%c0_14, %c0_15] : memref<2x32xf32, #tpu.memory_space<vmem>>, vector<1x32xf32>
    %c0_16 = arith.constant 0 : index
    %c0_17 = arith.constant 0 : index
    %14 = vector.load %arg2[%c0_16, %c0_17] : memref<2x32xf32, #tpu.memory_space<vmem>>, vector<1x32xf32>
    %c1 = arith.constant 1 : index
    %c0_18 = arith.constant 0 : index
    %15 = vector.load %arg1[%c1, %c0_18] : memref<2x32xf32, #tpu.memory_space<vmem>>, vector<1x32xf32>
    %c1_19 = arith.constant 1 : index
    %c0_20 = arith.constant 0 : index
    %16 = vector.load %arg2[%c1_19, %c0_20] : memref<2x32xf32, #tpu.memory_space<vmem>>, vector<1x32xf32>
    %17 = arith.truncf %13 : vector<1x32xf32> to vector<1x32xbf16>
    %18 = arith.truncf %15 : vector<1x32xf32> to vector<1x32xbf16>
    %cst_21 = arith.constant dense<0.000000e+00> : vector<1x128xf32>
    %19 = tpu.matmul %18, %11, %cst_21 {dimension_numbers = #tpu.dot_dimension_numbers<[1], [0], [0], [1], [0, 0, 1, 1], [], []>} : vector<1x32xbf16>, vector<32x128xbf16>, vector<1x128xf32> -> vector<1x128xf32>
    %20 = arith.addf %19, %12 : vector<1x128xf32>
    %21 = vector.extract_strided_slice %8 {offsets = [0, 0], sizes = [1, 128], strides = [1, 1]} : vector<8x128xf32> to vector<1x128xf32>
    %cst_22 = arith.constant dense<0.000000e+00> : vector<1x128xf32>
    %22 = tpu.matmul %17, %9, %cst_22 {dimension_numbers = #tpu.dot_dimension_numbers<[1], [0], [0], [1], [0, 0, 1, 1], [], []>} : vector<1x32xbf16>, vector<32x128xbf16>, vector<1x128xf32> -> vector<1x128xf32>
    %23 = arith.addf %21, %22 : vector<1x128xf32>
    %24 = arith.negf %23 : vector<1x128xf32>
    %25 = math.exp %24 : vector<1x128xf32>
    %cst_23 = arith.constant 1.000000e+00 : f32
    %26 = vector.broadcast %cst_23 : f32 to vector<1x128xf32>
    %27 = arith.addf %26, %25 : vector<1x128xf32>
    %28 = arith.divf %26, %27 : vector<1x128xf32>
    %29 = math.tanh %23 : vector<1x128xf32>
    %30 = vector.extract_strided_slice %28 {offsets = [0, 0], sizes = [1, 32], strides = [1, 1]} : vector<1x128xf32> to vector<1x32xf32>
    %31 = vector.extract_strided_slice %28 {offsets = [0, 32], sizes = [1, 32], strides = [1, 1]} : vector<1x128xf32> to vector<1x32xf32>
    %32 = vector.extract_strided_slice %29 {offsets = [0, 64], sizes = [1, 32], strides = [1, 1]} : vector<1x128xf32> to vector<1x32xf32>
    %33 = vector.extract_strided_slice %28 {offsets = [0, 96], sizes = [1, 32], strides = [1, 1]} : vector<1x128xf32> to vector<1x32xf32>
    %34 = arith.mulf %31, %14 : vector<1x32xf32>
    %35 = arith.mulf %30, %32 : vector<1x32xf32>
    %36 = arith.addf %34, %35 : vector<1x32xf32>
    %37 = math.tanh %36 : vector<1x32xf32>
    %38 = arith.mulf %33, %37 : vector<1x32xf32>
    %39 = arith.truncf %38 : vector<1x32xf32> to vector<1x32xbf16>
    %cst_24 = arith.constant dense<0.000000e+00> : vector<1x128xf32>
    %40 = tpu.matmul %39, %10, %cst_24 {dimension_numbers = #tpu.dot_dimension_numbers<[1], [0], [0], [1], [0, 0, 1, 1], [], []>} : vector<1x32xbf16>, vector<32x128xbf16>, vector<1x128xf32> -> vector<1x128xf32>
    %41 = arith.addf %40, %20 : vector<1x128xf32>
    %42 = arith.negf %41 : vector<1x128xf32>
    %43 = math.exp %42 : vector<1x128xf32>
    %cst_25 = arith.constant 1.000000e+00 : f32
    %44 = vector.broadcast %cst_25 : f32 to vector<1x128xf32>
    %45 = arith.addf %44, %43 : vector<1x128xf32>
    %46 = arith.divf %44, %45 : vector<1x128xf32>
    %47 = math.tanh %41 : vector<1x128xf32>
    %48 = vector.extract_strided_slice %46 {offsets = [0, 0], sizes = [1, 32], strides = [1, 1]} : vector<1x128xf32> to vector<1x32xf32>
    %49 = vector.extract_strided_slice %46 {offsets = [0, 32], sizes = [1, 32], strides = [1, 1]} : vector<1x128xf32> to vector<1x32xf32>
    %50 = vector.extract_strided_slice %47 {offsets = [0, 64], sizes = [1, 32], strides = [1, 1]} : vector<1x128xf32> to vector<1x32xf32>
    %51 = vector.extract_strided_slice %46 {offsets = [0, 96], sizes = [1, 32], strides = [1, 1]} : vector<1x128xf32> to vector<1x32xf32>
    %52 = arith.mulf %49, %16 : vector<1x32xf32>
    %53 = arith.mulf %48, %50 : vector<1x32xf32>
    %54 = arith.addf %52, %53 : vector<1x32xf32>
    %55 = math.tanh %54 : vector<1x32xf32>
    %56 = arith.mulf %51, %55 : vector<1x32xf32>
    %57 = arith.truncf %56 : vector<1x32xf32> to vector<1x32xbf16>
    %cst_26 = arith.constant dense<0.000000e+00> : vector<1x128xf32>
    %58 = tpu.matmul %57, %11, %cst_26 {dimension_numbers = #tpu.dot_dimension_numbers<[1], [0], [0], [1], [0, 0, 1, 1], [], []>} : vector<1x32xbf16>, vector<32x128xbf16>, vector<1x128xf32> -> vector<1x128xf32>
    %59 = arith.addf %58, %12 : vector<1x128xf32>
    %60 = vector.extract_strided_slice %8 {offsets = [1, 0], sizes = [1, 128], strides = [1, 1]} : vector<8x128xf32> to vector<1x128xf32>
    %cst_27 = arith.constant dense<0.000000e+00> : vector<1x128xf32>
    %61 = tpu.matmul %39, %9, %cst_27 {dimension_numbers = #tpu.dot_dimension_numbers<[1], [0], [0], [1], [0, 0, 1, 1], [], []>} : vector<1x32xbf16>, vector<32x128xbf16>, vector<1x128xf32> -> vector<1x128xf32>
    %62 = arith.addf %60, %61 : vector<1x128xf32>
    %63 = arith.negf %62 : vector<1x128xf32>
    %64 = math.exp %63 : vector<1x128xf32>
    %cst_28 = arith.constant 1.000000e+00 : f32
    %65 = vector.broadcast %cst_28 : f32 to vector<1x128xf32>
    %66 = arith.addf %65, %64 : vector<1x128xf32>
    %67 = arith.divf %65, %66 : vector<1x128xf32>
    %68 = math.tanh %62 : vector<1x128xf32>
    %69 = vector.extract_strided_slice %67 {offsets = [0, 0], sizes = [1, 32], strides = [1, 1]} : vector<1x128xf32> to vector<1x32xf32>
    %70 = vector.extract_strided_slice %67 {offsets = [0, 32], sizes = [1, 32], strides = [1, 1]} : vector<1x128xf32> to vector<1x32xf32>
    %71 = vector.extract_strided_slice %68 {offsets = [0, 64], sizes = [1, 32], strides = [1, 1]} : vector<1x128xf32> to vector<1x32xf32>
    %72 = vector.extract_strided_slice %67 {offsets = [0, 96], sizes = [1, 32], strides = [1, 1]} : vector<1x128xf32> to vector<1x32xf32>
    %73 = arith.mulf %70, %36 : vector<1x32xf32>
    %74 = arith.mulf %69, %71 : vector<1x32xf32>
    %75 = arith.addf %73, %74 : vector<1x32xf32>
    %76 = math.tanh %75 : vector<1x32xf32>
    %77 = arith.mulf %72, %76 : vector<1x32xf32>
    %78 = arith.truncf %77 : vector<1x32xf32> to vector<1x32xbf16>
    %cst_29 = arith.constant dense<0.000000e+00> : vector<1x128xf32>
    %79 = tpu.matmul %78, %10, %cst_29 {dimension_numbers = #tpu.dot_dimension_numbers<[1], [0], [0], [1], [0, 0, 1, 1], [], []>} : vector<1x32xbf16>, vector<32x128xbf16>, vector<1x128xf32> -> vector<1x128xf32>
    %80 = arith.addf %79, %59 : vector<1x128xf32>
    %81 = arith.negf %80 : vector<1x128xf32>
    %82 = math.exp %81 : vector<1x128xf32>
    %cst_30 = arith.constant 1.000000e+00 : f32
    %83 = vector.broadcast %cst_30 : f32 to vector<1x128xf32>
    %84 = arith.addf %83, %82 : vector<1x128xf32>
    %85 = arith.divf %83, %84 : vector<1x128xf32>
    %86 = math.tanh %80 : vector<1x128xf32>
    %87 = vector.extract_strided_slice %85 {offsets = [0, 0], sizes = [1, 32], strides = [1, 1]} : vector<1x128xf32> to vector<1x32xf32>
    %88 = vector.extract_strided_slice %85 {offsets = [0, 32], sizes = [1, 32], strides = [1, 1]} : vector<1x128xf32> to vector<1x32xf32>
    %89 = vector.extract_strided_slice %86 {offsets = [0, 64], sizes = [1, 32], strides = [1, 1]} : vector<1x128xf32> to vector<1x32xf32>
    %90 = vector.extract_strided_slice %85 {offsets = [0, 96], sizes = [1, 32], strides = [1, 1]} : vector<1x128xf32> to vector<1x32xf32>
    %91 = arith.mulf %88, %54 : vector<1x32xf32>
    %92 = arith.mulf %87, %89 : vector<1x32xf32>
    %93 = arith.addf %91, %92 : vector<1x32xf32>
    %94 = math.tanh %93 : vector<1x32xf32>
    %95 = arith.mulf %90, %94 : vector<1x32xf32>
    %96 = arith.truncf %95 : vector<1x32xf32> to vector<1x32xbf16>
    %cst_31 = arith.constant dense<0.000000e+00> : vector<1x128xf32>
    %97 = tpu.matmul %96, %11, %cst_31 {dimension_numbers = #tpu.dot_dimension_numbers<[1], [0], [0], [1], [0, 0, 1, 1], [], []>} : vector<1x32xbf16>, vector<32x128xbf16>, vector<1x128xf32> -> vector<1x128xf32>
    %98 = arith.addf %97, %12 : vector<1x128xf32>
    %99 = vector.extract_strided_slice %8 {offsets = [2, 0], sizes = [1, 128], strides = [1, 1]} : vector<8x128xf32> to vector<1x128xf32>
    %cst_32 = arith.constant dense<0.000000e+00> : vector<1x128xf32>
    %100 = tpu.matmul %78, %9, %cst_32 {dimension_numbers = #tpu.dot_dimension_numbers<[1], [0], [0], [1], [0, 0, 1, 1], [], []>} : vector<1x32xbf16>, vector<32x128xbf16>, vector<1x128xf32> -> vector<1x128xf32>
    %101 = arith.addf %99, %100 : vector<1x128xf32>
    %102 = arith.negf %101 : vector<1x128xf32>
    %103 = math.exp %102 : vector<1x128xf32>
    %cst_33 = arith.constant 1.000000e+00 : f32
    %104 = vector.broadcast %cst_33 : f32 to vector<1x128xf32>
    %105 = arith.addf %104, %103 : vector<1x128xf32>
    %106 = arith.divf %104, %105 : vector<1x128xf32>
    %107 = math.tanh %101 : vector<1x128xf32>
    %108 = vector.extract_strided_slice %106 {offsets = [0, 0], sizes = [1, 32], strides = [1, 1]} : vector<1x128xf32> to vector<1x32xf32>
    %109 = vector.extract_strided_slice %106 {offsets = [0, 32], sizes = [1, 32], strides = [1, 1]} : vector<1x128xf32> to vector<1x32xf32>
    %110 = vector.extract_strided_slice %107 {offsets = [0, 64], sizes = [1, 32], strides = [1, 1]} : vector<1x128xf32> to vector<1x32xf32>
    %111 = vector.extract_strided_slice %106 {offsets = [0, 96], sizes = [1, 32], strides = [1, 1]} : vector<1x128xf32> to vector<1x32xf32>
    %112 = arith.mulf %109, %75 : vector<1x32xf32>
    %113 = arith.mulf %108, %110 : vector<1x32xf32>
    %114 = arith.addf %112, %113 : vector<1x32xf32>
    %115 = math.tanh %114 : vector<1x32xf32>
    %116 = arith.mulf %111, %115 : vector<1x32xf32>
    %117 = arith.truncf %116 : vector<1x32xf32> to vector<1x32xbf16>
    %cst_34 = arith.constant dense<0.000000e+00> : vector<1x128xf32>
    %118 = tpu.matmul %117, %10, %cst_34 {dimension_numbers = #tpu.dot_dimension_numbers<[1], [0], [0], [1], [0, 0, 1, 1], [], []>} : vector<1x32xbf16>, vector<32x128xbf16>, vector<1x128xf32> -> vector<1x128xf32>
    %119 = arith.addf %118, %98 : vector<1x128xf32>
    %120 = arith.negf %119 : vector<1x128xf32>
    %121 = math.exp %120 : vector<1x128xf32>
    %cst_35 = arith.constant 1.000000e+00 : f32
    %122 = vector.broadcast %cst_35 : f32 to vector<1x128xf32>
    %123 = arith.addf %122, %121 : vector<1x128xf32>
    %124 = arith.divf %122, %123 : vector<1x128xf32>
    %125 = math.tanh %119 : vector<1x128xf32>
    %126 = vector.extract_strided_slice %124 {offsets = [0, 0], sizes = [1, 32], strides = [1, 1]} : vector<1x128xf32> to vector<1x32xf32>
    %127 = vector.extract_strided_slice %124 {offsets = [0, 32], sizes = [1, 32], strides = [1, 1]} : vector<1x128xf32> to vector<1x32xf32>
    %128 = vector.extract_strided_slice %125 {offsets = [0, 64], sizes = [1, 32], strides = [1, 1]} : vector<1x128xf32> to vector<1x32xf32>
    %129 = vector.extract_strided_slice %124 {offsets = [0, 96], sizes = [1, 32], strides = [1, 1]} : vector<1x128xf32> to vector<1x32xf32>
    %130 = arith.mulf %127, %93 : vector<1x32xf32>
    %131 = arith.mulf %126, %128 : vector<1x32xf32>
    %132 = arith.addf %130, %131 : vector<1x32xf32>
    %133 = math.tanh %132 : vector<1x32xf32>
    %134 = arith.mulf %129, %133 : vector<1x32xf32>
    %135 = arith.truncf %134 : vector<1x32xf32> to vector<1x32xbf16>
    %cst_36 = arith.constant dense<0.000000e+00> : vector<1x128xf32>
    %136 = tpu.matmul %135, %11, %cst_36 {dimension_numbers = #tpu.dot_dimension_numbers<[1], [0], [0], [1], [0, 0, 1, 1], [], []>} : vector<1x32xbf16>, vector<32x128xbf16>, vector<1x128xf32> -> vector<1x128xf32>
    %137 = arith.addf %136, %12 : vector<1x128xf32>
    %138 = vector.extract_strided_slice %8 {offsets = [3, 0], sizes = [1, 128], strides = [1, 1]} : vector<8x128xf32> to vector<1x128xf32>
    %cst_37 = arith.constant dense<0.000000e+00> : vector<1x128xf32>
    %139 = tpu.matmul %117, %9, %cst_37 {dimension_numbers = #tpu.dot_dimension_numbers<[1], [0], [0], [1], [0, 0, 1, 1], [], []>} : vector<1x32xbf16>, vector<32x128xbf16>, vector<1x128xf32> -> vector<1x128xf32>
    %140 = arith.addf %138, %139 : vector<1x128xf32>
    %141 = arith.negf %140 : vector<1x128xf32>
    %142 = math.exp %141 : vector<1x128xf32>
    %cst_38 = arith.constant 1.000000e+00 : f32
    %143 = vector.broadcast %cst_38 : f32 to vector<1x128xf32>
    %144 = arith.addf %143, %142 : vector<1x128xf32>
    %145 = arith.divf %143, %144 : vector<1x128xf32>
    %146 = math.tanh %140 : vector<1x128xf32>
    %147 = vector.extract_strided_slice %145 {offsets = [0, 0], sizes = [1, 32], strides = [1, 1]} : vector<1x128xf32> to vector<1x32xf32>
    %148 = vector.extract_strided_slice %145 {offsets = [0, 32], sizes = [1, 32], strides = [1, 1]} : vector<1x128xf32> to vector<1x32xf32>
    %149 = vector.extract_strided_slice %146 {offsets = [0, 64], sizes = [1, 32], strides = [1, 1]} : vector<1x128xf32> to vector<1x32xf32>
    %150 = vector.extract_strided_slice %145 {offsets = [0, 96], sizes = [1, 32], strides = [1, 1]} : vector<1x128xf32> to vector<1x32xf32>
    %151 = arith.mulf %148, %114 : vector<1x32xf32>
    %152 = arith.mulf %147, %149 : vector<1x32xf32>
    %153 = arith.addf %151, %152 : vector<1x32xf32>
    %154 = math.tanh %153 : vector<1x32xf32>
    %155 = arith.mulf %150, %154 : vector<1x32xf32>
    %156 = arith.truncf %155 : vector<1x32xf32> to vector<1x32xbf16>
    %cst_39 = arith.constant dense<0.000000e+00> : vector<1x128xf32>
    %157 = tpu.matmul %156, %10, %cst_39 {dimension_numbers = #tpu.dot_dimension_numbers<[1], [0], [0], [1], [0, 0, 1, 1], [], []>} : vector<1x32xbf16>, vector<32x128xbf16>, vector<1x128xf32> -> vector<1x128xf32>
    %158 = arith.addf %157, %137 : vector<1x128xf32>
    %159 = arith.negf %158 : vector<1x128xf32>
    %160 = math.exp %159 : vector<1x128xf32>
    %cst_40 = arith.constant 1.000000e+00 : f32
    %161 = vector.broadcast %cst_40 : f32 to vector<1x128xf32>
    %162 = arith.addf %161, %160 : vector<1x128xf32>
    %163 = arith.divf %161, %162 : vector<1x128xf32>
    %164 = math.tanh %158 : vector<1x128xf32>
    %165 = vector.extract_strided_slice %163 {offsets = [0, 0], sizes = [1, 32], strides = [1, 1]} : vector<1x128xf32> to vector<1x32xf32>
    %166 = vector.extract_strided_slice %163 {offsets = [0, 32], sizes = [1, 32], strides = [1, 1]} : vector<1x128xf32> to vector<1x32xf32>
    %167 = vector.extract_strided_slice %164 {offsets = [0, 64], sizes = [1, 32], strides = [1, 1]} : vector<1x128xf32> to vector<1x32xf32>
    %168 = vector.extract_strided_slice %163 {offsets = [0, 96], sizes = [1, 32], strides = [1, 1]} : vector<1x128xf32> to vector<1x32xf32>
    %169 = arith.mulf %166, %132 : vector<1x32xf32>
    %170 = arith.mulf %165, %167 : vector<1x32xf32>
    %171 = arith.addf %169, %170 : vector<1x32xf32>
    %172 = math.tanh %171 : vector<1x32xf32>
    %173 = arith.mulf %168, %172 : vector<1x32xf32>
    %174 = arith.truncf %173 : vector<1x32xf32> to vector<1x32xbf16>
    %cst_41 = arith.constant dense<0.000000e+00> : vector<1x128xf32>
    %175 = tpu.matmul %174, %11, %cst_41 {dimension_numbers = #tpu.dot_dimension_numbers<[1], [0], [0], [1], [0, 0, 1, 1], [], []>} : vector<1x32xbf16>, vector<32x128xbf16>, vector<1x128xf32> -> vector<1x128xf32>
    %176 = arith.addf %175, %12 : vector<1x128xf32>
    %177 = vector.extract_strided_slice %8 {offsets = [4, 0], sizes = [1, 128], strides = [1, 1]} : vector<8x128xf32> to vector<1x128xf32>
    %cst_42 = arith.constant dense<0.000000e+00> : vector<1x128xf32>
    %178 = tpu.matmul %156, %9, %cst_42 {dimension_numbers = #tpu.dot_dimension_numbers<[1], [0], [0], [1], [0, 0, 1, 1], [], []>} : vector<1x32xbf16>, vector<32x128xbf16>, vector<1x128xf32> -> vector<1x128xf32>
    %179 = arith.addf %177, %178 : vector<1x128xf32>
    %180 = arith.negf %179 : vector<1x128xf32>
    %181 = math.exp %180 : vector<1x128xf32>
    %cst_43 = arith.constant 1.000000e+00 : f32
    %182 = vector.broadcast %cst_43 : f32 to vector<1x128xf32>
    %183 = arith.addf %182, %181 : vector<1x128xf32>
    %184 = arith.divf %182, %183 : vector<1x128xf32>
    %185 = math.tanh %179 : vector<1x128xf32>
    %186 = vector.extract_strided_slice %184 {offsets = [0, 0], sizes = [1, 32], strides = [1, 1]} : vector<1x128xf32> to vector<1x32xf32>
    %187 = vector.extract_strided_slice %184 {offsets = [0, 32], sizes = [1, 32], strides = [1, 1]} : vector<1x128xf32> to vector<1x32xf32>
    %188 = vector.extract_strided_slice %185 {offsets = [0, 64], sizes = [1, 32], strides = [1, 1]} : vector<1x128xf32> to vector<1x32xf32>
    %189 = vector.extract_strided_slice %184 {offsets = [0, 96], sizes = [1, 32], strides = [1, 1]} : vector<1x128xf32> to vector<1x32xf32>
    %190 = arith.mulf %187, %153 : vector<1x32xf32>
    %191 = arith.mulf %186, %188 : vector<1x32xf32>
    %192 = arith.addf %190, %191 : vector<1x32xf32>
    %193 = math.tanh %192 : vector<1x32xf32>
    %194 = arith.mulf %189, %193 : vector<1x32xf32>
    %195 = arith.truncf %194 : vector<1x32xf32> to vector<1x32xbf16>
    %cst_44 = arith.constant dense<0.000000e+00> : vector<1x128xf32>
    %196 = tpu.matmul %195, %10, %cst_44 {dimension_numbers = #tpu.dot_dimension_numbers<[1], [0], [0], [1], [0, 0, 1, 1], [], []>} : vector<1x32xbf16>, vector<32x128xbf16>, vector<1x128xf32> -> vector<1x128xf32>
    %197 = arith.addf %196, %176 : vector<1x128xf32>
    %198 = arith.negf %197 : vector<1x128xf32>
    %199 = math.exp %198 : vector<1x128xf32>
    %cst_45 = arith.constant 1.000000e+00 : f32
    %200 = vector.broadcast %cst_45 : f32 to vector<1x128xf32>
    %201 = arith.addf %200, %199 : vector<1x128xf32>
    %202 = arith.divf %200, %201 : vector<1x128xf32>
    %203 = math.tanh %197 : vector<1x128xf32>
    %204 = vector.extract_strided_slice %202 {offsets = [0, 0], sizes = [1, 32], strides = [1, 1]} : vector<1x128xf32> to vector<1x32xf32>
    %205 = vector.extract_strided_slice %202 {offsets = [0, 32], sizes = [1, 32], strides = [1, 1]} : vector<1x128xf32> to vector<1x32xf32>
    %206 = vector.extract_strided_slice %203 {offsets = [0, 64], sizes = [1, 32], strides = [1, 1]} : vector<1x128xf32> to vector<1x32xf32>
    %207 = vector.extract_strided_slice %202 {offsets = [0, 96], sizes = [1, 32], strides = [1, 1]} : vector<1x128xf32> to vector<1x32xf32>
    %208 = arith.mulf %205, %171 : vector<1x32xf32>
    %209 = arith.mulf %204, %206 : vector<1x32xf32>
    %210 = arith.addf %208, %209 : vector<1x32xf32>
    %211 = math.tanh %210 : vector<1x32xf32>
    %212 = arith.mulf %207, %211 : vector<1x32xf32>
    %213 = arith.truncf %212 : vector<1x32xf32> to vector<1x32xbf16>
    %cst_46 = arith.constant dense<0.000000e+00> : vector<1x128xf32>
    %214 = tpu.matmul %213, %11, %cst_46 {dimension_numbers = #tpu.dot_dimension_numbers<[1], [0], [0], [1], [0, 0, 1, 1], [], []>} : vector<1x32xbf16>, vector<32x128xbf16>, vector<1x128xf32> -> vector<1x128xf32>
    %215 = arith.addf %214, %12 : vector<1x128xf32>
    %216 = vector.extract_strided_slice %8 {offsets = [5, 0], sizes = [1, 128], strides = [1, 1]} : vector<8x128xf32> to vector<1x128xf32>
    %cst_47 = arith.constant dense<0.000000e+00> : vector<1x128xf32>
    %217 = tpu.matmul %195, %9, %cst_47 {dimension_numbers = #tpu.dot_dimension_numbers<[1], [0], [0], [1], [0, 0, 1, 1], [], []>} : vector<1x32xbf16>, vector<32x128xbf16>, vector<1x128xf32> -> vector<1x128xf32>
    %218 = arith.addf %216, %217 : vector<1x128xf32>
    %219 = arith.negf %218 : vector<1x128xf32>
    %220 = math.exp %219 : vector<1x128xf32>
    %cst_48 = arith.constant 1.000000e+00 : f32
    %221 = vector.broadcast %cst_48 : f32 to vector<1x128xf32>
    %222 = arith.addf %221, %220 : vector<1x128xf32>
    %223 = arith.divf %221, %222 : vector<1x128xf32>
    %224 = math.tanh %218 : vector<1x128xf32>
    %225 = vector.extract_strided_slice %223 {offsets = [0, 0], sizes = [1, 32], strides = [1, 1]} : vector<1x128xf32> to vector<1x32xf32>
    %226 = vector.extract_strided_slice %223 {offsets = [0, 32], sizes = [1, 32], strides = [1, 1]} : vector<1x128xf32> to vector<1x32xf32>
    %227 = vector.extract_strided_slice %224 {offsets = [0, 64], sizes = [1, 32], strides = [1, 1]} : vector<1x128xf32> to vector<1x32xf32>
    %228 = vector.extract_strided_slice %223 {offsets = [0, 96], sizes = [1, 32], strides = [1, 1]} : vector<1x128xf32> to vector<1x32xf32>
    %229 = arith.mulf %226, %192 : vector<1x32xf32>
    %230 = arith.mulf %225, %227 : vector<1x32xf32>
    %231 = arith.addf %229, %230 : vector<1x32xf32>
    %232 = math.tanh %231 : vector<1x32xf32>
    %233 = arith.mulf %228, %232 : vector<1x32xf32>
    %234 = arith.truncf %233 : vector<1x32xf32> to vector<1x32xbf16>
    %cst_49 = arith.constant dense<0.000000e+00> : vector<1x128xf32>
    %235 = tpu.matmul %234, %10, %cst_49 {dimension_numbers = #tpu.dot_dimension_numbers<[1], [0], [0], [1], [0, 0, 1, 1], [], []>} : vector<1x32xbf16>, vector<32x128xbf16>, vector<1x128xf32> -> vector<1x128xf32>
    %236 = arith.addf %235, %215 : vector<1x128xf32>
    %237 = arith.negf %236 : vector<1x128xf32>
    %238 = math.exp %237 : vector<1x128xf32>
    %cst_50 = arith.constant 1.000000e+00 : f32
    %239 = vector.broadcast %cst_50 : f32 to vector<1x128xf32>
    %240 = arith.addf %239, %238 : vector<1x128xf32>
    %241 = arith.divf %239, %240 : vector<1x128xf32>
    %242 = math.tanh %236 : vector<1x128xf32>
    %243 = vector.extract_strided_slice %241 {offsets = [0, 0], sizes = [1, 32], strides = [1, 1]} : vector<1x128xf32> to vector<1x32xf32>
    %244 = vector.extract_strided_slice %241 {offsets = [0, 32], sizes = [1, 32], strides = [1, 1]} : vector<1x128xf32> to vector<1x32xf32>
    %245 = vector.extract_strided_slice %242 {offsets = [0, 64], sizes = [1, 32], strides = [1, 1]} : vector<1x128xf32> to vector<1x32xf32>
    %246 = vector.extract_strided_slice %241 {offsets = [0, 96], sizes = [1, 32], strides = [1, 1]} : vector<1x128xf32> to vector<1x32xf32>
    %247 = arith.mulf %244, %210 : vector<1x32xf32>
    %248 = arith.mulf %243, %245 : vector<1x32xf32>
    %249 = arith.addf %247, %248 : vector<1x32xf32>
    %250 = math.tanh %249 : vector<1x32xf32>
    %251 = arith.mulf %246, %250 : vector<1x32xf32>
    %252 = arith.truncf %251 : vector<1x32xf32> to vector<1x32xbf16>
    %cst_51 = arith.constant dense<0.000000e+00> : vector<1x128xf32>
    %253 = tpu.matmul %252, %11, %cst_51 {dimension_numbers = #tpu.dot_dimension_numbers<[1], [0], [0], [1], [0, 0, 1, 1], [], []>} : vector<1x32xbf16>, vector<32x128xbf16>, vector<1x128xf32> -> vector<1x128xf32>
    %254 = arith.addf %253, %12 : vector<1x128xf32>
    %255 = vector.extract_strided_slice %8 {offsets = [6, 0], sizes = [1, 128], strides = [1, 1]} : vector<8x128xf32> to vector<1x128xf32>
    %cst_52 = arith.constant dense<0.000000e+00> : vector<1x128xf32>
    %256 = tpu.matmul %234, %9, %cst_52 {dimension_numbers = #tpu.dot_dimension_numbers<[1], [0], [0], [1], [0, 0, 1, 1], [], []>} : vector<1x32xbf16>, vector<32x128xbf16>, vector<1x128xf32> -> vector<1x128xf32>
    %257 = arith.addf %255, %256 : vector<1x128xf32>
    %258 = arith.negf %257 : vector<1x128xf32>
    %259 = math.exp %258 : vector<1x128xf32>
    %cst_53 = arith.constant 1.000000e+00 : f32
    %260 = vector.broadcast %cst_53 : f32 to vector<1x128xf32>
    %261 = arith.addf %260, %259 : vector<1x128xf32>
    %262 = arith.divf %260, %261 : vector<1x128xf32>
    %263 = math.tanh %257 : vector<1x128xf32>
    %264 = vector.extract_strided_slice %262 {offsets = [0, 0], sizes = [1, 32], strides = [1, 1]} : vector<1x128xf32> to vector<1x32xf32>
    %265 = vector.extract_strided_slice %262 {offsets = [0, 32], sizes = [1, 32], strides = [1, 1]} : vector<1x128xf32> to vector<1x32xf32>
    %266 = vector.extract_strided_slice %263 {offsets = [0, 64], sizes = [1, 32], strides = [1, 1]} : vector<1x128xf32> to vector<1x32xf32>
    %267 = vector.extract_strided_slice %262 {offsets = [0, 96], sizes = [1, 32], strides = [1, 1]} : vector<1x128xf32> to vector<1x32xf32>
    %268 = arith.mulf %265, %231 : vector<1x32xf32>
    %269 = arith.mulf %264, %266 : vector<1x32xf32>
    %270 = arith.addf %268, %269 : vector<1x32xf32>
    %271 = math.tanh %270 : vector<1x32xf32>
    %272 = arith.mulf %267, %271 : vector<1x32xf32>
    %273 = arith.truncf %272 : vector<1x32xf32> to vector<1x32xbf16>
    %cst_54 = arith.constant dense<0.000000e+00> : vector<1x128xf32>
    %274 = tpu.matmul %273, %10, %cst_54 {dimension_numbers = #tpu.dot_dimension_numbers<[1], [0], [0], [1], [0, 0, 1, 1], [], []>} : vector<1x32xbf16>, vector<32x128xbf16>, vector<1x128xf32> -> vector<1x128xf32>
    %275 = arith.addf %274, %254 : vector<1x128xf32>
    %276 = arith.negf %275 : vector<1x128xf32>
    %277 = math.exp %276 : vector<1x128xf32>
    %cst_55 = arith.constant 1.000000e+00 : f32
    %278 = vector.broadcast %cst_55 : f32 to vector<1x128xf32>
    %279 = arith.addf %278, %277 : vector<1x128xf32>
    %280 = arith.divf %278, %279 : vector<1x128xf32>
    %281 = math.tanh %275 : vector<1x128xf32>
    %282 = vector.extract_strided_slice %280 {offsets = [0, 0], sizes = [1, 32], strides = [1, 1]} : vector<1x128xf32> to vector<1x32xf32>
    %283 = vector.extract_strided_slice %280 {offsets = [0, 32], sizes = [1, 32], strides = [1, 1]} : vector<1x128xf32> to vector<1x32xf32>
    %284 = vector.extract_strided_slice %281 {offsets = [0, 64], sizes = [1, 32], strides = [1, 1]} : vector<1x128xf32> to vector<1x32xf32>
    %285 = vector.extract_strided_slice %280 {offsets = [0, 96], sizes = [1, 32], strides = [1, 1]} : vector<1x128xf32> to vector<1x32xf32>
    %286 = arith.mulf %283, %249 : vector<1x32xf32>
    %287 = arith.mulf %282, %284 : vector<1x32xf32>
    %288 = arith.addf %286, %287 : vector<1x32xf32>
    %289 = math.tanh %288 : vector<1x32xf32>
    %290 = arith.mulf %285, %289 : vector<1x32xf32>
    %291 = arith.truncf %290 : vector<1x32xf32> to vector<1x32xbf16>
    %cst_56 = arith.constant dense<0.000000e+00> : vector<1x128xf32>
    %292 = tpu.matmul %291, %11, %cst_56 {dimension_numbers = #tpu.dot_dimension_numbers<[1], [0], [0], [1], [0, 0, 1, 1], [], []>} : vector<1x32xbf16>, vector<32x128xbf16>, vector<1x128xf32> -> vector<1x128xf32>
    %293 = arith.addf %292, %12 : vector<1x128xf32>
    %294 = vector.extract_strided_slice %8 {offsets = [7, 0], sizes = [1, 128], strides = [1, 1]} : vector<8x128xf32> to vector<1x128xf32>
    %cst_57 = arith.constant dense<0.000000e+00> : vector<1x128xf32>
    %295 = tpu.matmul %273, %9, %cst_57 {dimension_numbers = #tpu.dot_dimension_numbers<[1], [0], [0], [1], [0, 0, 1, 1], [], []>} : vector<1x32xbf16>, vector<32x128xbf16>, vector<1x128xf32> -> vector<1x128xf32>
    %296 = arith.addf %294, %295 : vector<1x128xf32>
    %297 = arith.negf %296 : vector<1x128xf32>
    %298 = math.exp %297 : vector<1x128xf32>
    %cst_58 = arith.constant 1.000000e+00 : f32
    %299 = vector.broadcast %cst_58 : f32 to vector<1x128xf32>
    %300 = arith.addf %299, %298 : vector<1x128xf32>
    %301 = arith.divf %299, %300 : vector<1x128xf32>
    %302 = math.tanh %296 : vector<1x128xf32>
    %303 = vector.extract_strided_slice %301 {offsets = [0, 0], sizes = [1, 32], strides = [1, 1]} : vector<1x128xf32> to vector<1x32xf32>
    %304 = vector.extract_strided_slice %301 {offsets = [0, 32], sizes = [1, 32], strides = [1, 1]} : vector<1x128xf32> to vector<1x32xf32>
    %305 = vector.extract_strided_slice %302 {offsets = [0, 64], sizes = [1, 32], strides = [1, 1]} : vector<1x128xf32> to vector<1x32xf32>
    %306 = vector.extract_strided_slice %301 {offsets = [0, 96], sizes = [1, 32], strides = [1, 1]} : vector<1x128xf32> to vector<1x32xf32>
    %307 = arith.mulf %304, %270 : vector<1x32xf32>
    %308 = arith.mulf %303, %305 : vector<1x32xf32>
    %309 = arith.addf %307, %308 : vector<1x32xf32>
    %310 = math.tanh %309 : vector<1x32xf32>
    %311 = arith.mulf %306, %310 : vector<1x32xf32>
    %312 = arith.truncf %311 : vector<1x32xf32> to vector<1x32xbf16>
    %cst_59 = arith.constant dense<0.000000e+00> : vector<1x128xf32>
    %313 = tpu.matmul %312, %10, %cst_59 {dimension_numbers = #tpu.dot_dimension_numbers<[1], [0], [0], [1], [0, 0, 1, 1], [], []>} : vector<1x32xbf16>, vector<32x128xbf16>, vector<1x128xf32> -> vector<1x128xf32>
    %314 = arith.addf %313, %293 : vector<1x128xf32>
    %315 = arith.negf %314 : vector<1x128xf32>
    %316 = math.exp %315 : vector<1x128xf32>
    %cst_60 = arith.constant 1.000000e+00 : f32
    %317 = vector.broadcast %cst_60 : f32 to vector<1x128xf32>
    %318 = arith.addf %317, %316 : vector<1x128xf32>
    %319 = arith.divf %317, %318 : vector<1x128xf32>
    %320 = math.tanh %314 : vector<1x128xf32>
    %321 = vector.extract_strided_slice %319 {offsets = [0, 0], sizes = [1, 32], strides = [1, 1]} : vector<1x128xf32> to vector<1x32xf32>
    %322 = vector.extract_strided_slice %319 {offsets = [0, 32], sizes = [1, 32], strides = [1, 1]} : vector<1x128xf32> to vector<1x32xf32>
    %323 = vector.extract_strided_slice %320 {offsets = [0, 64], sizes = [1, 32], strides = [1, 1]} : vector<1x128xf32> to vector<1x32xf32>
    %324 = vector.extract_strided_slice %319 {offsets = [0, 96], sizes = [1, 32], strides = [1, 1]} : vector<1x128xf32> to vector<1x32xf32>
    %325 = arith.mulf %322, %288 : vector<1x32xf32>
    %326 = arith.mulf %321, %323 : vector<1x32xf32>
    %327 = arith.addf %325, %326 : vector<1x32xf32>
    %328 = math.tanh %327 : vector<1x32xf32>
    %329 = arith.mulf %324, %328 : vector<1x32xf32>
    %330 = arith.truncf %329 : vector<1x32xf32> to vector<1x32xbf16>
    %331 = tpu.concatenate %311, %329 in 0 : vector<1x32xf32>, vector<1x32xf32> -> vector<2x32xf32>
    %c0_61 = arith.constant 0 : index
    %c0_62 = arith.constant 0 : index
    %332 = vector.load %arg12[%c0_61, %c0_62] : memref<2x32xf32, #tpu.memory_space<vmem>>, vector<2x32xf32>
    tpu.vector_store %arg12[%c0_61, %c0_62], %331 {strides = array<i32>} : memref<2x32xf32, #tpu.memory_space<vmem>>, vector<2x32xf32>,
    %333 = tpu.concatenate %309, %327 in 0 : vector<1x32xf32>, vector<1x32xf32> -> vector<2x32xf32>
    %c0_63 = arith.constant 0 : index
    %c0_64 = arith.constant 0 : index
    %334 = vector.load %arg13[%c0_63, %c0_64] : memref<2x32xf32, #tpu.memory_space<vmem>>, vector<2x32xf32>
    tpu.vector_store %arg13[%c0_63, %c0_64], %333 {strides = array<i32>} : memref<2x32xf32, #tpu.memory_space<vmem>>, vector<2x32xf32>,
    %335 = tpu.concatenate %57, %96, %135, %174, %213, %252, %291, %330 in 0 : vector<1x32xbf16>, vector<1x32xbf16>, vector<1x32xbf16>, vector<1x32xbf16>, vector<1x32xbf16>, vector<1x32xbf16>, vector<1x32xbf16>, vector<1x32xbf16> -> vector<8x32xbf16>
    %c0_65 = arith.constant 0 : index
    %c0_66 = arith.constant 0 : index
    %336 = vector.load %arg9[%c0_65, %c0_66] : memref<32x128xbf16, #tpu.memory_space<vmem>>, vector<32x128xbf16>
    %cst_67 = arith.constant dense<0.000000e+00> : vector<8x128xf32>
    %337 = tpu.matmul %335, %336, %cst_67 {dimension_numbers = #tpu.dot_dimension_numbers<[1], [0], [0], [1], [0, 0, 1, 1], [], []>} : vector<8x32xbf16>, vector<32x128xbf16>, vector<8x128xf32> -> vector<8x128xf32>
    %c0_68 = arith.constant 0 : index
    %c0_69 = arith.constant 0 : index
    %338 = vector.load %arg10[%c0_68, %c0_69] : memref<1x128xf32, #tpu.memory_space<vmem>>, vector<1x128xf32>
    %339 = vector.broadcast %338 : vector<1x128xf32> to vector<8x128xf32>
    %340 = arith.addf %337, %339 : vector<8x128xf32>
    %c0_70 = arith.constant 0 : index
    %c0_71 = arith.constant 0 : index
    %341 = vector.load %arg11[%c0_70, %c0_71] : memref<8x128xf32, #tpu.memory_space<vmem>>, vector<8x128xf32>
    tpu.vector_store %arg11[%c0_70, %c0_71], %340 {strides = array<i32>} : memref<8x128xf32, #tpu.memory_space<vmem>>, vector<8x128xf32>,
    return
  }
}

</mosaic_0001>

<bundles_post_ra>
// kernel: tree_decoder_forward.1
= control target key start
LH: loop header
LB: loop body
LE: loop exit
PB: predicated region body
PF: predicated region fallthrough
CT: control target
= control target key end

     0   :  { %19 = vsyncpa [#allocation3], 0  ;;  %v2502_v1 = vmov 0.0   ;;  %vm2503_vm0 = vmmov 0   ;;  %vm153_vm1 = vcmask 261120   ;;  %vm78_vm2 = vcmask 392192   ;;  %s3077_s0 = inlined_call_operand.vmem [shape: f32[8,48], index: 0, kind: input, shape index: {}]   ;;  %s3078_s1 = inlined_call_operand.vmem [shape: f32[2,32], index: 1, kind: input, shape index: {}]   ;;  %s3079_s2 = inlined_call_operand.vmem [shape: f32[2,32], index: 2, kind: input, shape index: {}]   ;;  %s3080_s3 = inlined_call_operand.vmem [shape: bf16[48,128], index: 3, kind: input, shape index: {}]   ;;  %s3081_s4 = inlined_call_operand.vmem [shape: bf16[32,128], index: 4, kind: input, shape index: {}]   ;;  %s3082_s5 = inlined_call_operand.vmem [shape: f32[1,128], index: 5, kind: input, shape index: {}]   ;;  %s3083_s6 = inlined_call_operand.vmem [shape: bf16[32,128], index: 6, kind: input, shape index: {}]   ;;  %s3084_s7 = inlined_call_operand.vmem [shape: bf16[32,128], index: 7, kind: input, shape index: {}]   ;;  %s3085_s8 = inlined_call_operand.vmem [shape: f32[1,128], index: 8, kind: input, shape index: {}]   ;;  %s3086_s9 = inlined_call_operand.vmem [shape: bf16[32,128], index: 9, kind: input, shape index: {}]   ;;  %s3087_s10 = inlined_call_operand.vmem [shape: f32[1,128], index: 10, kind: input, shape index: {}]   ;;  %s3088_s11 = inlined_call_operand.hbm [shape: f32[8,128], index: 11, kind: output, shape index: {0}]   ;;  %s3089_s12 = inlined_call_operand.hbm [shape: f32[2,32], index: 12, kind: output, shape index: {1}]   ;;  %s3090_s13 = inlined_call_operand.hbm [shape: f32[2,32], index: 13, kind: output, shape index: {2}]  }
   0x1   :  { %v2287_v0 = vld [vmem:[%s3080_s3] sm:$0xff]   ;;  %2029 = vmatprep.subr.bf16.mxu0 %v2502_v1  ;;  %2039 = vmatprep.subr.bf16.mxu1 %v2502_v1  ;;  %v2289_v3 = vld [vmem:[%s3080_s3 + $0x8] sm:$0xff]   ;;  %v2291_v7 = vld [vmem:[%s3080_s3 + $0x10] sm:$0xff]  }
   0x2   :  { %v2588_v2 = vld [vmem:[%s3084_s7] sm:$0xff]   ;;  %2030 = vmatpush3.bf16.msra.mxu0 %v2287_v0  ;;  %2043 = vmatprep.mubr.msk.bf16.mxu1 %vm2503_vm0, %v2502_v1  ;;  %v2600_v4 = vld [vmem:[%s3084_s7 + $0x8] sm:$0xff]  }
   0x3   :  { %2040 = vmatpush3.bf16.msra.mxu1 %v2588_v2  ;;  %2031 = vmatprep.subr.bf16.mxu0 %v2502_v1  ;;  %v137_v5 = vld [vmem:[%s3078_s1 + $0x1] sm:$0x1]  ;;  %v2627_v12 = vld [vmem:[%s3081_s4 + $0x8] sm:$0xff]   ;;  %v135_v13 = vld [vmem:[%s3078_s1] sm:$0x1] }
   0x4   :  { %2041 = vmatprep.subr.bf16.mxu1 %v2502_v1  ;;  %2035 = vmatprep.mubr.msk.bf16.mxu0 %vm2503_vm0, %v2502_v1  ;;  %v140_v6 = vpack.c.bf16 %v137_v5, %v137_v5  ;;  %v44_v8 = vld [vmem:[%s3077_s0] sm:$0xff] }
   0x5   :  { %v2619_v9 = vld [vmem:[%s3081_s4] sm:$0xff]   ;;  %v45_v10 = vmax.f32 %v44_v8, 0.0 }
   0x6   :  { %2032 = vmatpush3.bf16.msra.mxu0 %v2289_v3 }
   0x7   :  { %2042 = vmatpush3.bf16.msra.mxu1 %v2600_v4  ;;  %2033 = vmatprep.subr.bf16.mxu0 %v2502_v1  ;;  %v46_v11 = vpack.c.bf16 %v45_v10, %v45_v10 }
   0x8   :  { %2047 = vmatprep.subr.bf16.mxu1 %v2502_v1 }
   0xa   :  { %2044 = vmatmul.mubr.msk.bf16.vlgmr.msra.gmra.mrb[0].mxu1 %vm153_vm1, %v140_v6  ;;  %2034 = vmatpush3.bf16.msra.mxu0 %v2291_v7 }
   0xb   :  { %2048 = vmatpush3.bf16.msra.mxu1 %v2619_v9  ;;  %2051 = vmatprep.mubr.msk.bf16.mxu1 %vm2503_vm0, %v2502_v1 }
   0xc   :  { %20 = vsyncpa [#allocation5], 0  ;;  %2049 = vmatprep.subr.bf16.mxu1 %v2502_v1  ;;  %2063 = vmatprep.subr.bf16.mxu0 %v2502_v1  ;;  %v139_v14 = vpack.c.bf16 %v135_v13, %v135_v13  ;;  %v1895_v15 = vld [vmem:[%s3082_s5] ss:$0 sm:$0xff]  ;;  %s2504_s27 = smov 64   ;;  %s2505_s5 = smov 32  }
   0xd   :  { %2036 = vmatmul.mubr.msk.bf16.vlgmr.msra.gmra.mrb[0].mxu0 %vm78_vm2, %v46_v11  ;;  %v136_v27 = vld [vmem:[%s3079_s2] sm:$0x1]  ;;  %v2671_v39 = vld [vmem:[%s3083_s6 + $0x8] sm:$0xff]   ;;  %v138_v44 = vld [vmem:[%s3079_s2 + $0x1] sm:$0x1]  ;;  %vm1712_vm3 = vcmask 1040384  }
   0xe   :  { %2064 = vmatpush3.bf16.msra.mxu0 %v2588_v2  ;;  %2067 = vmatprep.mubr.msk.bf16.mxu0 %vm2503_vm0, %v2502_v1  ;;  %v2665_v38 = vld [vmem:[%s3083_s6] sm:$0xff]   ;;  %vm1755_vm4 = vsmask.f32 256  ;;  %vm1762_vm6 = vcmask 1041408   ;;  %vm1763_vm7 = vsmask.f32 1280 }
   0xf   :  { %2050 = vmatpush3.bf16.msra.mxu1 %v2627_v12  ;;  %2065 = vmatprep.subr.bf16.mxu0 %v2502_v1  ;;  %v2692_v46 = vld [vmem:[%s3085_s8] sm:$0x1]  ;;  %vm1756_vm5 = vmand %vm1712_vm3, %vm1755_vm4  ;;  %vm1771_vm9 = vcmask 1042432   ;;  %vm1772_vm10 = vsmask.f32 2304  ;;  %vm1780_vm12 = vcmask 1043456  }
  0x10   :  { %2055 = vmatprep.subr.bf16.mxu1 %v2502_v1  ;;  %vm2832_vm8 = vmand %vm1762_vm6, %vm1763_vm7  ;;  %vm1781_vm13 = vsmask.f32 3328  ;;  %vm1718_vm15 = vcmask 254976  }
  0x11   :  { %vm2931_vm11 = vmand %vm1771_vm9, %vm1772_vm10 }
  0x12   :  { %2052 = vmatmul.mubr.msk.bf16.vlgmr.msra.gmra.mrb[4].mxu1 %vm153_vm1, %v139_v14  ;;  %2066 = vmatpush3.bf16.msra.mxu0 %v2600_v4  ;;  %vm1782_vm14 = vmand %vm1780_vm12, %vm1781_vm13 }
  0x13   :  { %2059 = vmatprep.mubr.msk.bf16.mxu1 %vm2503_vm0, %v2502_v1  ;;  %2071 = vmatprep.subr.bf16.mxu0 %v2502_v1 }
  0x14   :  { %2056 = vmatpush3.bf16.msra.mxu1 %v2665_v38 }
  0x15   :  { %2057 = vmatprep.subr.bf16.mxu1 %v2502_v1 }
  0x18   :  { %2058 = vmatpush3.bf16.msra.mxu1 %v2671_v39 }
  0x19   :  { %2087 = vmatprep.subr.bf16.mxu1 %v2502_v1 }
  0xe0   :  { %v116_v16 = vpop.f32.mrb[0].mxu0 }
  0xe1   :  { %v2037_v17 = vpop.f32.mrb[1].mxu0  ;;  %v2650_v18 = vadd.f32 %v1895_v15, %v116_v16 }
  0xe2   :  { %v119_v19 = vpop.f32.mrb[2].mxu0 }
  0xe3   :  { %v2038_v20 = vpop.f32.mrb[3].mxu0 }
  0xe5   :  { %v246_v21 = vpop.f32.mrb[4].mxu1 }
  0xe6   :  { %v252_v22 = vadd.f32 %v246_v21, %v2650_v18  ;;  %v2053_v23 = vpop.f32.mrb[5].mxu1 }
  0xe7   :  { %v249_v24 = vpop.f32.mrb[6].mxu1 }
  0xe8   :  { %2298 = vtanh.f32 %v252_v22  ;;  %v2054_v25 = vpop.f32.mrb[7].mxu1  ;;  %v1906_v28 = vmul.f32 -1.442695, %v252_v22 }
  0xea   :  { %2300 = vpow2.f32 %v1906_v28 }
  0xf2   :  { %v2299_v26 = vpop.eup %2298 }
  0xf3   :  { %266 = vrot.lane.b32.xlu0 %v2299_v26, %s2504_s27 }
  0xf4   :  { %v2301_v29 = vpop.eup %2300 }
  0xf5   :  { %v256_v30 = vadd.f32 1.0, %v2301_v29 }
  0xf7   :  { %261 = vrot.lane.b32.xlu0 %v136_v27, %s2505_s5  ;;  %2302 = vrcp.f32 %v256_v30 }
 0x101   :  { %v2303_v31 = vpop.eup %2302 }
 0x165   :  { %v267_v32 = vpop.permute.xlu0 %266 }
 0x166   :  { %v269_v33 = vmul.f32 %v2303_v31, %v267_v32 }
 0x168   :  { %271 = vrot.lane.b32.xlu1 %v269_v33, %s2505_s5 }
 0x169   :  { %v262_v34 = vpop.permute.xlu0 %261 }
 0x16a   :  { %v264_v35 = vmul.f32 %v2303_v31, %v262_v34 }
 0x1da   :  { %v272_v36 = vpop.permute.xlu1 %271 }
 0x1db   :  { %v2659_v37 = vadd.f32 %v272_v36, %v264_v35 }
 0x1dd   :  { %2304 = vtanh.f32 %v2659_v37  ;;  %v467_v23 = vrot.slane %v2659_v37, 7 }
 0x1e7   :  { %v2305_v40 = vpop.eup %2304 }
 0x1e8   :  { %277 = vrot.lane.b32.xlu1 %v2305_v40, %s2504_s27 }
 0x25a   :  { %v278_v41 = vpop.permute.xlu1 %277 }
 0x25b   :  { %v280_v42 = vmul.f32 %v2303_v31, %v278_v41 }
 0x25d   :  { %v281_v43 = vpack.c.bf16 %v280_v42, %v280_v42 }
 0x25f   :  { %283 = vrot.lane.b32.xlu0 %v281_v43, %s2505_s5 }
 0x263   :  { %348 = vrot.lane.b32.xlu0 %v138_v44, %s2505_s5 }
 0x2d1   :  { %v284_v45 = vpop.permute.xlu0 %283 }
 0x2d2   :  { %2060 = vmatmul.mubr.msk.bf16.vlgmr.msra.gmra.mrb[0].mxu1 %vm153_vm1, %v284_v45 }
 0x2d3   :  { %2088 = vmatpush3.bf16.msra.mxu1 %v2588_v2  ;;  %2091 = vmatprep.mubr.msk.bf16.mxu1 %vm2503_vm0, %v2502_v1 }
 0x2d4   :  { %2089 = vmatprep.subr.bf16.mxu1 %v2502_v1 }
 0x2d5   :  { %v349_v59 = vpop.permute.xlu0 %348 }
 0x2d7   :  { %2090 = vmatpush3.bf16.msra.mxu1 %v2600_v4 }
 0x2d8   :  { %2095 = vmatprep.subr.bf16.mxu1 %v2502_v1 }
 0x3a5   :  { %v334_v47 = vpop.f32.mrb[0].mxu1 }
 0x3a6   :  { %v2239_v48 = vadd.f32 %v334_v47, %v2692_v46  ;;  %v2061_v49 = vpop.f32.mrb[1].mxu1 }
 0x3a7   :  { %v337_v50 = vpop.f32.mrb[2].mxu1 }
 0x3a8   :  { %2306 = vtanh.f32 %v2239_v48  ;;  %v2062_v51 = vpop.f32.mrb[3].mxu1  ;;  %v1910_v53 = vmul.f32 -1.442695, %v2239_v48 }
 0x3aa   :  { %2308 = vpow2.f32 %v1910_v53 }
 0x3b2   :  { %v2307_v52 = vpop.eup %2306 }
 0x3b3   :  { %353 = vrot.lane.b32.xlu1 %v2307_v52, %s2504_s27 }
 0x3b4   :  { %v2309_v54 = vpop.eup %2308 }
 0x3b5   :  { %v343_v55 = vadd.f32 1.0, %v2309_v54 }
 0x3b7   :  { %2310 = vrcp.f32 %v343_v55 }
 0x3c1   :  { %v2311_v56 = vpop.eup %2310 }
 0x3c2   :  { %v351_v60 = vmul.f32 %v2311_v56, %v349_v59 }
 0x425   :  { %v354_v57 = vpop.permute.xlu1 %353 }
 0x426   :  { %v356_v58 = vmul.f32 %v2311_v56, %v354_v57 }
 0x428   :  { %358 = vrot.lane.b32.xlu1 %v356_v58, %s2505_s5 }
 0x49a   :  { %v359_v61 = vpop.permute.xlu1 %358 }
 0x49b   :  { %v2697_v62 = vadd.f32 %v359_v61, %v351_v60 }
 0x49d   :  { %2312 = vtanh.f32 %v2697_v62 }
 0x4a7   :  { %v2313_v63 = vpop.eup %2312 }
 0x4a8   :  { %364 = vrot.lane.b32.xlu0 %v2313_v63, %s2504_s27 }
 0x51a   :  { %v365_v0 = vpop.permute.xlu0 %364 }
 0x51b   :  { %v367_v3 = vmul.f32 %v2311_v56, %v365_v0 }
 0x51d   :  { %v2701_v5 = vpack.c.bf16 %v367_v3, %v367_v3 }
 0x51f   :  { %370 = vrot.lane.b32.xlu1 %v2701_v5, %s2505_s5 }
 0x591   :  { %v371_v6 = vpop.permute.xlu1 %370 }
 0x592   :  { %2068 = vmatmul.mubr.msk.bf16.vlgmr.msra.gmra.mrb[4].mxu0 %vm153_vm1, %v371_v6 }
 0x593   :  { %2072 = vmatpush3.bf16.msra.mxu0 %v2619_v9  ;;  %2075 = vmatprep.mubr.msk.bf16.mxu0 %vm2503_vm0, %v2502_v1 }
 0x594   :  { %2073 = vmatprep.subr.bf16.mxu0 %v2502_v1 }
 0x597   :  { %2074 = vmatpush3.bf16.msra.mxu0 %v2627_v12 }
 0x598   :  { %2079 = vmatprep.subr.bf16.mxu0 %v2502_v1 }
 0x59a   :  { %2076 = vmatmul.mubr.msk.bf16.vlgmr.msra.gmra.mrb[8].mxu0 %vm153_vm1, %v284_v45 }
 0x59b   :  { %2080 = vmatpush3.bf16.msra.mxu0 %v2665_v38  ;;  %2083 = vmatprep.mubr.msk.bf16.mxu0 %vm2503_vm0, %v2502_v1 }
 0x59c   :  { %2081 = vmatprep.subr.bf16.mxu0 %v2502_v1 }
 0x59f   :  { %2082 = vmatpush3.bf16.msra.mxu0 %v2671_v39 }
 0x5a0   :  { %2111 = vmatprep.subr.bf16.mxu0 %v2502_v1 }
 0x66d   :  { %v449_v7 = vpop.f32.mrb[8].mxu0 }
 0x66e   :  { %v456_v8 = vrot.slane %v449_v7, 7  ;;  %v2077_v10 = vpop.f32.mrb[9].mxu0 }
 0x66f   :  { %v452_v11 = vpop.f32.mrb[10].mxu0 }
 0x670   :  { %v458_v13 = vadd.f32 %v456_v8, %v2650_v18  ;;  %v2078_v14 = vpop.f32.mrb[11].mxu0 }
 0x672   :  { %2314 = vtanh.f32 %v458_v13  ;;  %v1913_v16 = vmul.f32 -1.442695, %v458_v13 }
 0x674   :  { %2316 = vpow2.f32 %v1913_v16 }
 0x67c   :  { %v2315_v15 = vpop.eup %2314 }
 0x67d   :  { %471 = vrot.lane.b32.xlu0 %v2315_v15, %s2504_s27 }
 0x67e   :  { %v2317_v17 = vpop.eup %2316 }
 0x67f   :  { %v462_v19 = vadd.f32 1.0, %v2317_v17 }
 0x681   :  { %2318 = vrcp.f32 %v462_v19 }
 0x68b   :  { %v2319_v20 = vpop.eup %2318 }
 0x68c   :  { %v469_v24 = vmul.f32 %v2319_v20, %v467_v23 }
 0x6ef   :  { %v472_v21 = vpop.permute.xlu0 %471 }
 0x6f0   :  { %v474_v22 = vmul.f32 %v2319_v20, %v472_v21 }
 0x6f2   :  { %476 = vrot.lane.b32.xlu1 %v474_v22, %s2505_s5 }
 0x764   :  { %v477_v25 = vpop.permute.xlu1 %476 }
 0x765   :  { %v2723_v26 = vadd.f32 %v477_v25, %v469_v24 }
 0x767   :  { %2320 = vtanh.f32 %v2723_v26  ;;  %v658_v10 = vrot.slane %v2723_v26, 7 }
 0x771   :  { %v2321_v27 = vpop.eup %2320 }
 0x772   :  { %482 = vrot.lane.b32.xlu0 %v2321_v27, %s2504_s27 }
 0x7e4   :  { %v483_v28 = vpop.permute.xlu0 %482 }
 0x7e5   :  { %v485_v29 = vmul.f32 %v2319_v20, %v483_v28 }
 0x7e7   :  { %v486_v30 = vpack.c.bf16 %v485_v29, %v485_v29 }
 0x7e9   :  { %v488_v31 = vshrl.u32 %v486_v30, 16 }
 0x7eb   :  { %490 = vrot.lane.b32.xlu1 %v488_v31, %s2505_s5 }
 0x85d   :  { %v491_v32 = vpop.permute.xlu1 %490 }
 0x85e   :  { %2084 = vmatmul.mubr.msk.bf16.vlgmr.msra.gmra.mrb[4].mxu0 %vm153_vm1, %v491_v32 }
 0x85f   :  { %2112 = vmatpush3.bf16.msra.mxu0 %v2588_v2  ;;  %2115 = vmatprep.mubr.msk.bf16.mxu0 %vm2503_vm0, %v2502_v1 }
 0x860   :  { %2113 = vmatprep.subr.bf16.mxu0 %v2502_v1 }
 0x863   :  { %2114 = vmatpush3.bf16.msra.mxu0 %v2600_v4 }
 0x864   :  { %2119 = vmatprep.subr.bf16.mxu0 %v2502_v1 }
 0x931   :  { %v529_v33 = vpop.f32.mrb[4].mxu0 }
 0x932   :  { %v2240_v34 = vadd.f32 %v529_v33, %v2692_v46  ;;  %v2085_v35 = vpop.f32.mrb[5].mxu0 }
 0x933   :  { %v532_v36 = vpop.f32.mrb[6].mxu0 }
 0x934   :  { %2322 = vtanh.f32 %v2240_v34  ;;  %v2086_v37 = vpop.f32.mrb[7].mxu0  ;;  %v1915_v41 = vmul.f32 -1.442695, %v2240_v34 }
 0x936   :  { %2324 = vpow2.f32 %v1915_v41 }
 0x93e   :  { %v2323_v40 = vpop.eup %2322 }
 0x93f   :  { %544 = vrot.lane.b32.xlu0 %v2323_v40, %s2504_s27 }
 0x940   :  { %v2325_v42 = vpop.eup %2324 }
 0x941   :  { %v538_v43 = vadd.f32 1.0, %v2325_v42 }
 0x943   :  { %2326 = vrcp.f32 %v538_v43 }
 0x94d   :  { %v2327_v44 = vpop.eup %2326 }
 0x94e   :  { %v542_v48 = vmul.f32 %v2327_v44, %v2697_v62 }
 0x9b1   :  { %v545_v45 = vpop.permute.xlu0 %544 }
 0x9b2   :  { %v547_v47 = vmul.f32 %v2327_v44, %v545_v45 }
 0x9b4   :  { %549 = vrot.lane.b32.xlu1 %v547_v47, %s2505_s5 }
 0xa26   :  { %v550_v49 = vpop.permute.xlu1 %549 }
 0xa27   :  { %v2739_v50 = vadd.f32 %v550_v49, %v542_v48 }
 0xa29   :  { %2328 = vtanh.f32 %v2739_v50 }
 0xa33   :  { %v2329_v51 = vpop.eup %2328 }
 0xa34   :  { %555 = vrot.lane.b32.xlu0 %v2329_v51, %s2504_s27 }
 0xaa6   :  { %v556_v52 = vpop.permute.xlu0 %555 }
 0xaa7   :  { %v558_v53 = vmul.f32 %v2327_v44, %v556_v52 }
 0xaa9   :  { %v2743_v54 = vpack.c.bf16 %v558_v53, %v558_v53 }
 0xaab   :  { %561 = vrot.lane.b32.xlu1 %v2743_v54, %s2505_s5  ;;  %v1733_v42 = vshll.u32 %v2743_v54, 16 }
 0xaad   :  { %v1757_v45 = vsel %vm1756_vm5, %v2701_v5, %v1733_v42 }
 0xb1d   :  { %v562_v55 = vpop.permute.xlu1 %561 }
 0xb1e   :  { %2092 = vmatmul.mubr.msk.bf16.vlgmr.msra.gmra.mrb[8].mxu1 %vm153_vm1, %v562_v55 }
 0xb1f   :  { %2096 = vmatpush3.bf16.msra.mxu1 %v2619_v9  ;;  %2099 = vmatprep.mubr.msk.bf16.mxu1 %vm2503_vm0, %v2502_v1 }
 0xb20   :  { %2097 = vmatprep.subr.bf16.mxu1 %v2502_v1 }
 0xb23   :  { %2098 = vmatpush3.bf16.msra.mxu1 %v2627_v12 }
 0xb24   :  { %2103 = vmatprep.subr.bf16.mxu1 %v2502_v1 }
 0xb26   :  { %2100 = vmatmul.mubr.msk.bf16.vlgmr.msra.gmra.mrb[12].mxu1 %vm153_vm1, %v491_v32 }
 0xb27   :  { %2104 = vmatpush3.bf16.msra.mxu1 %v2665_v38  ;;  %2107 = vmatprep.mubr.msk.bf16.mxu1 %vm2503_vm0, %v2502_v1 }
 0xb28   :  { %2105 = vmatprep.subr.bf16.mxu1 %v2502_v1 }
 0xb2b   :  { %2106 = vmatpush3.bf16.msra.mxu1 %v2671_v39 }
 0xb2c   :  { %2135 = vmatprep.subr.bf16.mxu1 %v2502_v1 }
 0xbf9   :  { %v640_v56 = vpop.f32.mrb[12].mxu1 }
 0xbfa   :  { %v647_v57 = vrot.slane %v640_v56, 6  ;;  %v2101_v58 = vpop.f32.mrb[13].mxu1 }
 0xbfb   :  { %v643_v59 = vpop.f32.mrb[14].mxu1 }
 0xbfc   :  { %v649_v60 = vadd.f32 %v647_v57, %v2650_v18  ;;  %v2102_v61 = vpop.f32.mrb[15].mxu1 }
 0xbfe   :  { %2330 = vtanh.f32 %v649_v60  ;;  %v1918_v63 = vmul.f32 -1.442695, %v649_v60 }
 0xc00   :  { %2332 = vpow2.f32 %v1918_v63 }
 0xc08   :  { %v2331_v62 = vpop.eup %2330 }
 0xc09   :  { %662 = vrot.lane.b32.xlu0 %v2331_v62, %s2504_s27 }
 0xc0a   :  { %v2333_v0 = vpop.eup %2332 }
 0xc0b   :  { %v653_v3 = vadd.f32 1.0, %v2333_v0 }
 0xc0d   :  { %2334 = vrcp.f32 %v653_v3 }
 0xc17   :  { %v2335_v6 = vpop.eup %2334 }
 0xc18   :  { %v660_v11 = vmul.f32 %v2335_v6, %v658_v10 }
 0xc7b   :  { %v663_v7 = vpop.permute.xlu0 %662 }
 0xc7c   :  { %v665_v8 = vmul.f32 %v2335_v6, %v663_v7 }
 0xc7e   :  { %667 = vrot.lane.b32.xlu1 %v665_v8, %s2505_s5 }
 0xcf0   :  { %v668_v13 = vpop.permute.xlu1 %667 }
 0xcf1   :  { %v2765_v14 = vadd.f32 %v668_v13, %v660_v11 }
 0xcf3   :  { %2336 = vtanh.f32 %v2765_v14  ;;  %v848_v61 = vrot.slane %v2765_v14, 7 }
 0xcfd   :  { %v2337_v15 = vpop.eup %2336 }
 0xcfe   :  { %673 = vrot.lane.b32.xlu0 %v2337_v15, %s2504_s27 }
 0xd70   :  { %v674_v16 = vpop.permute.xlu0 %673 }
 0xd71   :  { %v676_v17 = vmul.f32 %v2335_v6, %v674_v16 }
 0xd73   :  { %v677_v19 = vpack.c.bf16 %v676_v17, %v676_v17 }
 0xd75   :  { %v679_v20 = vrot.slane %v677_v19, 1 }
 0xd77   :  { %680 = vrot.lane.b32.xlu1 %v679_v20, %s2505_s5 }
 0xde9   :  { %v681_v21 = vpop.permute.xlu1 %680 }
 0xdea   :  { %2108 = vmatmul.mubr.msk.bf16.vlgmr.msra.gmra.mrb[8].mxu1 %vm153_vm1, %v681_v21 }
 0xdeb   :  { %2136 = vmatpush3.bf16.msra.mxu1 %v2588_v2  ;;  %2139 = vmatprep.mubr.msk.bf16.mxu1 %vm2503_vm0, %v2502_v1 }
 0xdec   :  { %2137 = vmatprep.subr.bf16.mxu1 %v2502_v1 }
 0xdef   :  { %2138 = vmatpush3.bf16.msra.mxu1 %v2600_v4 }
 0xdf0   :  { %2143 = vmatprep.subr.bf16.mxu1 %v2502_v1 }
 0xebd   :  { %v719_v22 = vpop.f32.mrb[8].mxu1 }
 0xebe   :  { %v2241_v23 = vadd.f32 %v719_v22, %v2692_v46  ;;  %v2109_v24 = vpop.f32.mrb[9].mxu1 }
 0xebf   :  { %v722_v25 = vpop.f32.mrb[10].mxu1 }
 0xec0   :  { %2338 = vtanh.f32 %v2241_v23  ;;  %v2110_v26 = vpop.f32.mrb[11].mxu1  ;;  %v1920_v28 = vmul.f32 -1.442695, %v2241_v23 }
 0xec2   :  { %2340 = vpow2.f32 %v1920_v28 }
 0xeca   :  { %v2339_v27 = vpop.eup %2338 }
 0xecb   :  { %734 = vrot.lane.b32.xlu0 %v2339_v27, %s2504_s27 }
 0xecc   :  { %v2341_v29 = vpop.eup %2340 }
 0xecd   :  { %v728_v30 = vadd.f32 1.0, %v2341_v29 }
 0xecf   :  { %2342 = vrcp.f32 %v728_v30 }
 0xed9   :  { %v2343_v31 = vpop.eup %2342 }
 0xeda   :  { %v732_v34 = vmul.f32 %v2343_v31, %v2739_v50 }
 0xf3d   :  { %v735_v32 = vpop.permute.xlu0 %734 }
 0xf3e   :  { %v737_v33 = vmul.f32 %v2343_v31, %v735_v32 }
 0xf40   :  { %739 = vrot.lane.b32.xlu1 %v737_v33, %s2505_s5 }
 0xfb2   :  { %v740_v35 = vpop.permute.xlu1 %739 }
 0xfb3   :  { %v2781_v36 = vadd.f32 %v740_v35, %v732_v34 }
 0xfb5   :  { %2344 = vtanh.f32 %v2781_v36 }
 0xfbf   :  { %v2345_v37 = vpop.eup %2344 }
 0xfc0   :  { %745 = vrot.lane.b32.xlu0 %v2345_v37, %s2504_s27 }
0x1032   :  { %v746_v40 = vpop.permute.xlu0 %745 }
0x1033   :  { %v748_v41 = vmul.f32 %v2343_v31, %v746_v40 }
0x1035   :  { %v749_v43 = vpack.c.bf16 %v748_v41, %v748_v41 }
0x1037   :  { %v1736_v44 = vrot.slane %v749_v43, 7  ;;  %751 = vrot.lane.b32.xlu1 %v749_v43, %s2505_s5 }
0x1039   :  { %v2790_v47 = vsel %vm1712_vm3, %v1757_v45, %v1736_v44 }
0x10a9   :  { %v752_v48 = vpop.permute.xlu1 %751 }
0x10aa   :  { %2116 = vmatmul.mubr.msk.bf16.vlgmr.msra.gmra.mrb[12].mxu0 %vm153_vm1, %v752_v48 }
0x10ab   :  { %2120 = vmatpush3.bf16.msra.mxu0 %v2619_v9  ;;  %2123 = vmatprep.mubr.msk.bf16.mxu0 %vm2503_vm0, %v2502_v1 }
0x10ac   :  { %2121 = vmatprep.subr.bf16.mxu0 %v2502_v1 }
0x10af   :  { %2122 = vmatpush3.bf16.msra.mxu0 %v2627_v12 }
0x10b0   :  { %2127 = vmatprep.subr.bf16.mxu0 %v2502_v1 }
0x10b2   :  { %2124 = vmatmul.mubr.msk.bf16.vlgmr.msra.gmra.mrb[16].mxu0 %vm153_vm1, %v681_v21 }
0x10b3   :  { %2128 = vmatpush3.bf16.msra.mxu0 %v2665_v38  ;;  %2131 = vmatprep.mubr.msk.bf16.mxu0 %vm2503_vm0, %v2502_v1 }
0x10b4   :  { %2129 = vmatprep.subr.bf16.mxu0 %v2502_v1 }
0x10b7   :  { %2130 = vmatpush3.bf16.msra.mxu0 %v2671_v39 }
0x10b8   :  { %2159 = vmatprep.subr.bf16.mxu0 %v2502_v1 }
0x1185   :  { %v830_v5 = vpop.f32.mrb[16].mxu0 }
0x1186   :  { %v837_v49 = vrot.slane %v830_v5, 5  ;;  %v2125_v50 = vpop.f32.mrb[17].mxu0 }
0x1187   :  { %v833_v51 = vpop.f32.mrb[18].mxu0 }
0x1188   :  { %v839_v52 = vadd.f32 %v837_v49, %v2650_v18  ;;  %v2126_v53 = vpop.f32.mrb[19].mxu0 }
0x118a   :  { %2346 = vtanh.f32 %v839_v52  ;;  %v1923_v55 = vmul.f32 -1.442695, %v839_v52 }
0x118c   :  { %2348 = vpow2.f32 %v1923_v55 }
0x1194   :  { %v2347_v54 = vpop.eup %2346 }
0x1195   :  { %852 = vrot.lane.b32.xlu0 %v2347_v54, %s2504_s27 }
0x1196   :  { %v2349_v56 = vpop.eup %2348 }
0x1197   :  { %v843_v57 = vadd.f32 1.0, %v2349_v56 }
0x1199   :  { %2350 = vrcp.f32 %v843_v57 }
0x11a3   :  { %v2351_v58 = vpop.eup %2350 }
0x11a4   :  { %v850_v62 = vmul.f32 %v2351_v58, %v848_v61 }
0x1207   :  { %v853_v59 = vpop.permute.xlu0 %852 }
0x1208   :  { %v855_v60 = vmul.f32 %v2351_v58, %v853_v59 }
0x120a   :  { %857 = vrot.lane.b32.xlu1 %v855_v60, %s2505_s5 }
0x127c   :  { %v858_v63 = vpop.permute.xlu1 %857 }
0x127d   :  { %v2810_v0 = vadd.f32 %v858_v63, %v850_v62 }
0x127f   :  { %2352 = vtanh.f32 %v2810_v0  ;;  %v1040_v55 = vrot.slane %v2810_v0, 7 }
0x1289   :  { %v2353_v3 = vpop.eup %2352 }
0x128a   :  { %863 = vrot.lane.b32.xlu0 %v2353_v3, %s2504_s27 }
0x12fc   :  { %v864_v6 = vpop.permute.xlu0 %863 }
0x12fd   :  { %v866_v7 = vmul.f32 %v2351_v58, %v864_v6 }
0x12ff   :  { %v867_v8 = vpack.c.bf16 %v866_v7, %v866_v7 }
0x1301   :  { %v869_v10 = vshrl.u32 %v867_v8, 16 }
0x1303   :  { %v871_v11 = vrot.slane %v869_v10, 1 }
0x1305   :  { %872 = vrot.lane.b32.xlu1 %v871_v11, %s2505_s5 }
0x1377   :  { %v873_v13 = vpop.permute.xlu1 %872 }
0x1378   :  { %2132 = vmatmul.mubr.msk.bf16.vlgmr.msra.gmra.mrb[12].mxu0 %vm153_vm1, %v873_v13 }
0x1379   :  { %2160 = vmatpush3.bf16.msra.mxu0 %v2588_v2  ;;  %2163 = vmatprep.mubr.msk.bf16.mxu0 %vm2503_vm0, %v2502_v1 }
0x137a   :  { %2161 = vmatprep.subr.bf16.mxu0 %v2502_v1 }
0x137d   :  { %2162 = vmatpush3.bf16.msra.mxu0 %v2600_v4 }
0x137e   :  { %2167 = vmatprep.subr.bf16.mxu0 %v2502_v1 }
0x144b   :  { %v911_v14 = vpop.f32.mrb[12].mxu0 }
0x144c   :  { %v2242_v15 = vadd.f32 %v911_v14, %v2692_v46  ;;  %v2133_v16 = vpop.f32.mrb[13].mxu0 }
0x144d   :  { %v914_v17 = vpop.f32.mrb[14].mxu0 }
0x144e   :  { %2354 = vtanh.f32 %v2242_v15  ;;  %v2134_v19 = vpop.f32.mrb[15].mxu0  ;;  %v1925_v21 = vmul.f32 -1.442695, %v2242_v15 }
0x1450   :  { %2356 = vpow2.f32 %v1925_v21 }
0x1458   :  { %v2355_v20 = vpop.eup %2354 }
0x1459   :  { %926 = vrot.lane.b32.xlu0 %v2355_v20, %s2504_s27 }
0x145a   :  { %v2357_v22 = vpop.eup %2356 }
0x145b   :  { %v920_v23 = vadd.f32 1.0, %v2357_v22 }
0x145d   :  { %2358 = vrcp.f32 %v920_v23 }
0x1467   :  { %v2359_v24 = vpop.eup %2358 }
0x1468   :  { %v924_v27 = vmul.f32 %v2359_v24, %v2781_v36 }
0x14cb   :  { %v927_v25 = vpop.permute.xlu0 %926 }
0x14cc   :  { %v929_v26 = vmul.f32 %v2359_v24, %v927_v25 }
0x14ce   :  { %931 = vrot.lane.b32.xlu1 %v929_v26, %s2505_s5 }
0x1540   :  { %v932_v28 = vpop.permute.xlu1 %931 }
0x1541   :  { %v2826_v29 = vadd.f32 %v932_v28, %v924_v27 }
0x1543   :  { %2360 = vtanh.f32 %v2826_v29 }
0x154d   :  { %v2361_v30 = vpop.eup %2360 }
0x154e   :  { %937 = vrot.lane.b32.xlu0 %v2361_v30, %s2504_s27 }
0x15c0   :  { %v938_v31 = vpop.permute.xlu0 %937 }
0x15c1   :  { %v940_v32 = vmul.f32 %v2359_v24, %v938_v31 }
0x15c3   :  { %v941_v33 = vpack.c.bf16 %v940_v32, %v940_v32 }
0x15c5   :  { %v1738_v34 = vshll.u32 %v941_v33, 16  ;;  %943 = vrot.lane.b32.xlu1 %v941_v33, %s2505_s5 }
0x15c7   :  { %v2836_v36 = vrot.slane %v1738_v34, 7 }
0x15c9   :  { %v1765_v37 = vsel %vm2832_vm8, %v2790_v47, %v2836_v36 }
0x1637   :  { %v944_v40 = vpop.permute.xlu1 %943 }
0x1638   :  { %2140 = vmatmul.mubr.msk.bf16.vlgmr.msra.gmra.mrb[16].mxu1 %vm153_vm1, %v944_v40 }
0x1639   :  { %2144 = vmatpush3.bf16.msra.mxu1 %v2619_v9  ;;  %2147 = vmatprep.mubr.msk.bf16.mxu1 %vm2503_vm0, %v2502_v1 }
0x163a   :  { %2145 = vmatprep.subr.bf16.mxu1 %v2502_v1 }
0x163d   :  { %2146 = vmatpush3.bf16.msra.mxu1 %v2627_v12 }
0x163e   :  { %2151 = vmatprep.subr.bf16.mxu1 %v2502_v1 }
0x1640   :  { %2148 = vmatmul.mubr.msk.bf16.vlgmr.msra.gmra.mrb[20].mxu1 %vm153_vm1, %v873_v13 }
0x1641   :  { %2152 = vmatpush3.bf16.msra.mxu1 %v2665_v38  ;;  %2155 = vmatprep.mubr.msk.bf16.mxu1 %vm2503_vm0, %v2502_v1 }
0x1642   :  { %2153 = vmatprep.subr.bf16.mxu1 %v2502_v1 }
0x1645   :  { %2154 = vmatpush3.bf16.msra.mxu1 %v2671_v39 }
0x1646   :  { %2183 = vmatprep.subr.bf16.mxu1 %v2502_v1 }
0x1713   :  { %v1022_v41 = vpop.f32.mrb[20].mxu1 }
0x1714   :  { %v1029_v42 = vrot.slane %v1022_v41, 4  ;;  %v2149_v43 = vpop.f32.mrb[21].mxu1 }
0x1715   :  { %v1025_v44 = vpop.f32.mrb[22].mxu1 }
0x1716   :  { %v1031_v45 = vadd.f32 %v1029_v42, %v2650_v18  ;;  %v2150_v48 = vpop.f32.mrb[23].mxu1 }
0x1718   :  { %2362 = vtanh.f32 %v1031_v45  ;;  %v1928_v49 = vmul.f32 -1.442695, %v1031_v45 }
0x171a   :  { %2364 = vpow2.f32 %v1928_v49 }
0x1722   :  { %v2363_v5 = vpop.eup %2362 }
0x1723   :  { %1044 = vrot.lane.b32.xlu0 %v2363_v5, %s2504_s27 }
0x1724   :  { %v2365_v50 = vpop.eup %2364 }
0x1725   :  { %v1035_v51 = vadd.f32 1.0, %v2365_v50 }
0x1727   :  { %2366 = vrcp.f32 %v1035_v51 }
0x1731   :  { %v2367_v52 = vpop.eup %2366 }
0x1732   :  { %v1042_v56 = vmul.f32 %v2367_v52, %v1040_v55 }
0x1795   :  { %v1045_v53 = vpop.permute.xlu0 %1044 }
0x1796   :  { %v1047_v54 = vmul.f32 %v2367_v52, %v1045_v53  ;;  %v2426_v53 = vld [vmem:[%s3084_s7] sm:$0xff]  }
0x1798   :  { %1049 = vrot.lane.b32.xlu1 %v1047_v54, %s2505_s5 }
0x180a   :  { %v1050_v57 = vpop.permute.xlu1 %1049 }
0x180b   :  { %v2860_v58 = vadd.f32 %v1050_v57, %v1042_v56 }
0x180d   :  { %2368 = vtanh.f32 %v2860_v58  ;;  %v1230_v41 = vrot.slane %v2860_v58, 7 }
0x1817   :  { %v2369_v59 = vpop.eup %2368 }
0x1818   :  { %1055 = vrot.lane.b32.xlu0 %v2369_v59, %s2504_s27 }
0x188a   :  { %v1056_v60 = vpop.permute.xlu0 %1055 }
0x188b   :  { %v1058_v61 = vmul.f32 %v2367_v52, %v1056_v60 }
0x188d   :  { %v1059_v62 = vpack.c.bf16 %v1058_v61, %v1058_v61 }
0x188f   :  { %v1061_v63 = vrot.slane %v1059_v62, 2 }
0x1891   :  { %1062 = vrot.lane.b32.xlu1 %v1061_v63, %s2505_s5 }
0x1903   :  { %v1063_v3 = vpop.permute.xlu1 %1062 }
0x1904   :  { %2156 = vmatmul.mubr.msk.bf16.vlgmr.msra.gmra.mrb[16].mxu1 %vm153_vm1, %v1063_v3 }
0x1905   :  { %2184 = vmatpush3.bf16.msra.mxu1 %v2588_v2  ;;  %2187 = vmatprep.mubr.msk.bf16.mxu1 %vm2503_vm0, %v2502_v1 }
0x1906   :  { %2185 = vmatprep.subr.bf16.mxu1 %v2502_v1 }
0x1909   :  { %2186 = vmatpush3.bf16.msra.mxu1 %v2600_v4 }
0x190a   :  { %2191 = vmatprep.subr.bf16.mxu1 %v2502_v1 }
0x19d7   :  { %v1101_v0 = vpop.f32.mrb[16].mxu1 }
0x19d8   :  { %v2243_v6 = vadd.f32 %v1101_v0, %v2692_v46  ;;  %v2157_v7 = vpop.f32.mrb[17].mxu1 }
0x19d9   :  { %v1104_v8 = vpop.f32.mrb[18].mxu1 }
0x19da   :  { %2370 = vtanh.f32 %v2243_v6  ;;  %v2158_v10 = vpop.f32.mrb[19].mxu1  ;;  %v1930_v2 = vmul.f32 -1.442695, %v2243_v6 }
0x19dc   :  { %2372 = vpow2.f32 %v1930_v2 }
0x19e4   :  { %v2371_v11 = vpop.eup %2370 }
0x19e5   :  { %1116 = vrot.lane.b32.xlu0 %v2371_v11, %s2504_s27 }
0x19e6   :  { %v2373_v13 = vpop.eup %2372 }
0x19e7   :  { %v1110_v14 = vadd.f32 1.0, %v2373_v13 }
0x19e9   :  { %2374 = vrcp.f32 %v1110_v14 }
0x19f3   :  { %v2375_v15 = vpop.eup %2374 }
0x19f4   :  { %v1114_v19 = vmul.f32 %v2375_v15, %v2826_v29 }
0x1a57   :  { %v1117_v16 = vpop.permute.xlu0 %1116 }
0x1a58   :  { %v1119_v17 = vmul.f32 %v2375_v15, %v1117_v16 }
0x1a5a   :  { %1121 = vrot.lane.b32.xlu1 %v1119_v17, %s2505_s5 }
0x1acc   :  { %v1122_v20 = vpop.permute.xlu1 %1121 }
0x1acd   :  { %v2876_v21 = vadd.f32 %v1122_v20, %v1114_v19  ;;  %v2945_v19 = vld [vmem:[%s3081_s4] sm:$0xff]   ;;  %v2954_v20 = vld [vmem:[%s3081_s4 + $0x8] sm:$0xff]  }
0x1acf   :  { %2376 = vtanh.f32 %v2876_v21 }
0x1ad9   :  { %v2377_v22 = vpop.eup %2376 }
0x1ada   :  { %1127 = vrot.lane.b32.xlu0 %v2377_v22, %s2504_s27 }
0x1b4c   :  { %v1128_v23 = vpop.permute.xlu0 %1127 }
0x1b4d   :  { %v1130_v24 = vmul.f32 %v2375_v15, %v1128_v23 }
0x1b4f   :  { %v1131_v25 = vpack.c.bf16 %v1130_v24, %v1130_v24 }
0x1b51   :  { %v1742_v26 = vrot.slane %v1131_v25, 6  ;;  %1133 = vrot.lane.b32.xlu1 %v1131_v25, %s2505_s5 }
0x1b53   :  { %v2887_v27 = vsel %vm1762_vm6, %v1765_v37, %v1742_v26 }
0x1bc3   :  { %v1134_v28 = vpop.permute.xlu1 %1133 }
0x1bc4   :  { %2164 = vmatmul.mubr.msk.bf16.vlgmr.msra.gmra.mrb[20].mxu0 %vm153_vm1, %v1134_v28 }
0x1bc5   :  { %2168 = vmatpush3.bf16.msra.mxu0 %v2619_v9  ;;  %2171 = vmatprep.mubr.msk.bf16.mxu0 %vm2503_vm0, %v2502_v1 }
0x1bc6   :  { %2169 = vmatprep.subr.bf16.mxu0 %v2502_v1 }
0x1bc9   :  { %2170 = vmatpush3.bf16.msra.mxu0 %v2627_v12 }
0x1bca   :  { %2175 = vmatprep.subr.bf16.mxu0 %v2502_v1 }
0x1bcc   :  { %2172 = vmatmul.mubr.msk.bf16.vlgmr.msra.gmra.mrb[24].mxu0 %vm153_vm1, %v1063_v3 }
0x1bcd   :  { %2176 = vmatpush3.bf16.msra.mxu0 %v2665_v38  ;;  %2179 = vmatprep.mubr.msk.bf16.mxu0 %vm2503_vm0, %v2502_v1 }
0x1bce   :  { %2177 = vmatprep.subr.bf16.mxu0 %v2502_v1 }
0x1bd1   :  { %2178 = vmatpush3.bf16.msra.mxu0 %v2671_v39 }
0x1bd2   :  { %2207 = vmatprep.subr.bf16.mxu0 %v2502_v1 }
0x1c9f   :  { %v1212_v9 = vpop.f32.mrb[24].mxu0 }
0x1ca0   :  { %v1219_v47 = vrot.slane %v1212_v9, 3  ;;  %v2173_v29 = vpop.f32.mrb[25].mxu0 }
0x1ca1   :  { %v1215_v30 = vpop.f32.mrb[26].mxu0 }
0x1ca2   :  { %v1221_v12 = vadd.f32 %v1219_v47, %v2650_v18  ;;  %v2174_v31 = vpop.f32.mrb[27].mxu0 }
0x1ca4   :  { %2378 = vtanh.f32 %v1221_v12  ;;  %v1933_v33 = vmul.f32 -1.442695, %v1221_v12 }
0x1ca6   :  { %2380 = vpow2.f32 %v1933_v33 }
0x1cae   :  { %v2379_v32 = vpop.eup %2378 }
0x1caf   :  { %1234 = vrot.lane.b32.xlu0 %v2379_v32, %s2504_s27 }
0x1cb0   :  { %v2381_v34 = vpop.eup %2380 }
0x1cb1   :  { %v1225_v35 = vadd.f32 1.0, %v2381_v34 }
0x1cb3   :  { %2382 = vrcp.f32 %v1225_v35 }
0x1cbd   :  { %v2383_v36 = vpop.eup %2382 }
0x1cbe   :  { %v1232_v42 = vmul.f32 %v2383_v36, %v1230_v41 }
0x1d21   :  { %v1235_v37 = vpop.permute.xlu0 %1234 }
0x1d22   :  { %v1237_v40 = vmul.f32 %v2383_v36, %v1235_v37 }
0x1d24   :  { %1239 = vrot.lane.b32.xlu1 %v1237_v40, %s2505_s5 }
0x1d96   :  { %v1240_v43 = vpop.permute.xlu1 %1239 }
0x1d97   :  { %v2907_v44 = vadd.f32 %v1240_v43, %v1232_v42 }
0x1d99   :  { %2384 = vtanh.f32 %v2907_v44  ;;  %v1422_v12 = vrot.slane %v2907_v44, 7 }
0x1da3   :  { %v2385_v45 = vpop.eup %2384 }
0x1da4   :  { %1245 = vrot.lane.b32.xlu0 %v2385_v45, %s2504_s27 }
0x1e16   :  { %v1246_v48 = vpop.permute.xlu0 %1245 }
0x1e17   :  { %v1248_v5 = vmul.f32 %v2383_v36, %v1246_v48 }
0x1e19   :  { %v1249_v49 = vpack.c.bf16 %v1248_v5, %v1248_v5 }
0x1e1b   :  { %v1251_v50 = vshrl.u32 %v1249_v49, 16 }
0x1e1d   :  { %v1253_v51 = vrot.slane %v1251_v50, 2 }
0x1e1f   :  { %1254 = vrot.lane.b32.xlu1 %v1253_v51, %s2505_s5 }
0x1e91   :  { %v1255_v52 = vpop.permute.xlu1 %1254 }
0x1e92   :  { %2180 = vmatmul.mubr.msk.bf16.vlgmr.msra.gmra.mrb[20].mxu0 %vm153_vm1, %v1255_v52 }
0x1e93   :  { %2208 = vmatpush3.bf16.msra.mxu0 %v2426_v53  ;;  %2211 = vmatprep.mubr.msk.bf16.mxu0 %vm2503_vm0, %v2502_v1 }
0x1e94   :  { %2209 = vmatprep.subr.bf16.mxu0 %v2502_v1 }
0x1e97   :  { %2210 = vmatpush3.bf16.msra.mxu0 %v2600_v4 }
0x1e98   :  { %2215 = vmatprep.subr.bf16.mxu0 %v2502_v1 }
0x1f65   :  { %v1293_v54 = vpop.f32.mrb[20].mxu0 }
0x1f66   :  { %v2244_v55 = vadd.f32 %v1293_v54, %v2692_v46  ;;  %v2181_v56 = vpop.f32.mrb[21].mxu0 }
0x1f67   :  { %v1296_v57 = vpop.f32.mrb[22].mxu0 }
0x1f68   :  { %2386 = vtanh.f32 %v2244_v55  ;;  %v2182_v58 = vpop.f32.mrb[23].mxu0  ;;  %v1935_v60 = vmul.f32 -1.442695, %v2244_v55 }
0x1f6a   :  { %2388 = vpow2.f32 %v1935_v60 }
0x1f72   :  { %v2387_v59 = vpop.eup %2386 }
0x1f73   :  { %1308 = vrot.lane.b32.xlu0 %v2387_v59, %s2504_s27 }
0x1f74   :  { %v2389_v61 = vpop.eup %2388 }
0x1f75   :  { %v1302_v62 = vadd.f32 1.0, %v2389_v61 }
0x1f77   :  { %2390 = vrcp.f32 %v1302_v62 }
0x1f81   :  { %v2391_v63 = vpop.eup %2390 }
0x1f82   :  { %v1306_v0 = vmul.f32 %v2391_v63, %v2876_v21 }
0x1fe5   :  { %v1309_v3 = vpop.permute.xlu0 %1308 }
0x1fe6   :  { %v1311_v4 = vmul.f32 %v2391_v63, %v1309_v3  ;;  %v2430_v3 = vld [vmem:[%s3083_s6 + $0x8] sm:$0xff]  }
0x1fe8   :  { %1313 = vrot.lane.b32.xlu1 %v1311_v4, %s2505_s5 }
0x205a   :  { %v1314_v6 = vpop.permute.xlu1 %1313 }
0x205b   :  { %v2925_v7 = vadd.f32 %v1314_v6, %v1306_v0 }
0x205d   :  { %2392 = vtanh.f32 %v2925_v7 }
0x2067   :  { %v2393_v8 = vpop.eup %2392 }
0x2068   :  { %1319 = vrot.lane.b32.xlu0 %v2393_v8, %s2504_s27 }
0x20da   :  { %v1320_v10 = vpop.permute.xlu0 %1319 }
0x20db   :  { %v1322_v11 = vmul.f32 %v2391_v63, %v1320_v10 }
0x20dd   :  { %v1323_v2 = vpack.c.bf16 %v1322_v11, %v1322_v11 }
0x20df   :  { %v1744_v13 = vshll.u32 %v1323_v2, 16  ;;  %1325 = vrot.lane.b32.xlu1 %v1323_v2, %s2505_s5 }
0x20e1   :  { %v2935_v15 = vrot.slane %v1744_v13, 6 }
0x20e3   :  { %v1774_v16 = vsel %vm2931_vm11, %v2887_v27, %v2935_v15  ;;  %v2429_v27 = vld [vmem:[%s3083_s6] sm:$0xff]  }
0x2151   :  { %v1326_v17 = vpop.permute.xlu1 %1325 }
0x2152   :  { %2188 = vmatmul.mubr.msk.bf16.vlgmr.msra.gmra.mrb[24].mxu1 %vm153_vm1, %v1326_v17 }
0x2153   :  { %2192 = vmatpush3.bf16.msra.mxu1 %v2945_v19  ;;  %2195 = vmatprep.mubr.msk.bf16.mxu1 %vm2503_vm0, %v2502_v1 }
0x2154   :  { %2193 = vmatprep.subr.bf16.mxu1 %v2502_v1 }
0x2157   :  { %2194 = vmatpush3.bf16.msra.mxu1 %v2954_v20 }
0x2158   :  { %2199 = vmatprep.subr.bf16.mxu1 %v2502_v1 }
0x215a   :  { %2196 = vmatmul.mubr.msk.bf16.vlgmr.msra.gmra.mrb[28].mxu1 %vm153_vm1, %v1255_v52 }
0x215b   :  { %2200 = vmatpush3.bf16.msra.mxu1 %v2665_v38  ;;  %2203 = vmatprep.mubr.msk.bf16.mxu1 %vm2503_vm0, %v2502_v1 }
0x215c   :  { %2201 = vmatprep.subr.bf16.mxu1 %v2502_v1 }
0x215f   :  { %2202 = vmatpush3.bf16.msra.mxu1 %v2671_v39 }
0x2160   :  { %2231 = vmatprep.subr.bf16.mxu1 %v2502_v1 }
0x222d   :  { %v1404_v21 = vpop.f32.mrb[28].mxu1 }
0x222e   :  { %v1411_v22 = vrot.slane %v1404_v21, 2  ;;  %v2197_v23 = vpop.f32.mrb[29].mxu1 }
0x222f   :  { %v1407_v24 = vpop.f32.mrb[30].mxu1 }
0x2230   :  { %v1413_v25 = vadd.f32 %v1411_v22, %v2650_v18  ;;  %v2198_v26 = vpop.f32.mrb[31].mxu1 }
0x2232   :  { %2394 = vtanh.f32 %v1413_v25  ;;  %v1938_v38 = vmul.f32 -1.442695, %v1413_v25 }
0x2234   :  { %2396 = vpow2.f32 %v1938_v38 }
0x223c   :  { %v2395_v28 = vpop.eup %2394 }
0x223d   :  { %1426 = vrot.lane.b32.xlu0 %v2395_v28, %s2504_s27 }
0x223e   :  { %v2397_v9 = vpop.eup %2396 }
0x223f   :  { %v1417_v47 = vadd.f32 1.0, %v2397_v9 }
0x2241   :  { %2398 = vrcp.f32 %v1417_v47  ;;  %v2431_v47 = vld [vmem:[%s3085_s8] sm:$0x1] }
0x224b   :  { %v2399_v29 = vpop.eup %2398 }
0x224c   :  { %v1424_v31 = vmul.f32 %v2399_v29, %v1422_v12 }
0x22af   :  { %v1427_v39 = vpop.permute.xlu0 %1426 }
0x22b0   :  { %v1429_v30 = vmul.f32 %v2399_v29, %v1427_v39 }
0x22b2   :  { %1431 = vrot.lane.b32.xlu1 %v1429_v30, %s2505_s5 }
0x2324   :  { %v1432_v32 = vpop.permute.xlu1 %1431 }
0x2325   :  { %v2969_v33 = vadd.f32 %v1432_v32, %v1424_v31 }
0x2327   :  { %2400 = vtanh.f32 %v2969_v33 }
0x2331   :  { %v2401_v34 = vpop.eup %2400 }
0x2332   :  { %1437 = vrot.lane.b32.xlu0 %v2401_v34, %s2504_s27 }
0x23a4   :  { %v1438_v35 = vpop.permute.xlu0 %1437 }
0x23a5   :  { %v1440_v36 = vmul.f32 %v2399_v29, %v1438_v35 }
0x23a7   :  { %v1441_v37 = vpack.c.bf16 %v1440_v36, %v1440_v36 }
0x23a9   :  { %v1443_v40 = vrot.slane %v1441_v37, 3 }
0x23ab   :  { %1444 = vrot.lane.b32.xlu1 %v1443_v40, %s2505_s5 }
0x241d   :  { %v1445_v41 = vpop.permute.xlu1 %1444 }
0x241e   :  { %2204 = vmatmul.mubr.msk.bf16.vlgmr.msra.gmra.mrb[24].mxu1 %vm153_vm1, %v1445_v41 }
0x241f   :  { %2235 = vmatprep.mubr.msk.bf16.mxu1 %vm2503_vm0, %v2502_v1 }
0x24f1   :  { %v1483_v42 = vpop.f32.mrb[24].mxu1 }
0x24f2   :  { %v2245_v43 = vadd.f32 %v1483_v42, %v2692_v46  ;;  %v2205_v44 = vpop.f32.mrb[25].mxu1 }
0x24f3   :  { %v1486_v45 = vpop.f32.mrb[26].mxu1 }
0x24f4   :  { %2402 = vtanh.f32 %v2245_v43  ;;  %v2206_v48 = vpop.f32.mrb[27].mxu1  ;;  %v1940_v49 = vmul.f32 -1.442695, %v2245_v43 }
0x24f6   :  { %2404 = vpow2.f32 %v1940_v49  ;;  %v2297_v49 = vld [vmem:[%s3086_s9 + $0x8] sm:$0xff]  }
0x24fe   :  { %v2403_v5 = vpop.eup %2402 }
0x24ff   :  { %1498 = vrot.lane.b32.xlu0 %v2403_v5, %s2504_s27  ;;  %v2296_v5 = vld [vmem:[%s3086_s9] sm:$0xff]   ;;  %s2506_s9 = smov 96  }
0x2500   :  { %v2405_v50 = vpop.eup %2404  ;;  %2232 = vmatpush3.bf16.msra.mxu1 %v2296_v5 }
0x2501   :  { %v1492_v51 = vadd.f32 1.0, %v2405_v50  ;;  %2233 = vmatprep.subr.bf16.mxu1 %v2502_v1 }
0x2503   :  { %2406 = vrcp.f32 %v1492_v51 }
0x2504   :  { %2234 = vmatpush3.bf16.msra.mxu1 %v2297_v49 }
0x250d   :  { %v2407_v52 = vpop.eup %2406 }
0x250e   :  { %v1496_v55 = vmul.f32 %v2407_v52, %v2925_v7 }
0x2571   :  { %v1499_v53 = vpop.permute.xlu0 %1498 }
0x2572   :  { %v1501_v54 = vmul.f32 %v2407_v52, %v1499_v53 }
0x2574   :  { %1503 = vrot.lane.b32.xlu1 %v1501_v54, %s2505_s5 }
0x25e6   :  { %v1504_v46 = vpop.permute.xlu1 %1503 }
0x25e7   :  { %v2981_v56 = vadd.f32 %v1504_v46, %v1496_v55 }
0x25e9   :  { %2408 = vtanh.f32 %v2981_v56 }
0x25f3   :  { %v2409_v57 = vpop.eup %2408 }
0x25f4   :  { %1509 = vrot.lane.b32.xlu0 %v2409_v57, %s2504_s27 }
0x2666   :  { %v1510_v58 = vpop.permute.xlu0 %1509 }
0x2667   :  { %v1512_v59 = vmul.f32 %v2407_v52, %v1510_v58 }
0x2669   :  { %v1513_v60 = vpack.c.bf16 %v1512_v59, %v1512_v59 }
0x266b   :  { %v1748_v61 = vrot.slane %v1513_v60, 5  ;;  %1515 = vrot.lane.b32.xlu1 %v1513_v60, %s2505_s5 }
0x266d   :  { %v2992_v62 = vsel %vm1771_vm9, %v1774_v16, %v1748_v61 }
0x26dd   :  { %v1516_v63 = vpop.permute.xlu1 %1515 }
0x26de   :  { %2212 = vmatmul.mubr.msk.bf16.vlgmr.msra.gmra.mrb[28].mxu0 %vm153_vm1, %v1516_v63 }
0x26df   :  { %2216 = vmatpush3.bf16.msra.mxu0 %v2945_v19  ;;  %2219 = vmatprep.mubr.msk.bf16.mxu0 %vm2503_vm0, %v2502_v1  ;;  %v1612_v19 = vrot.slane %v2969_v33, 7 }
0x26e0   :  { %2217 = vmatprep.subr.bf16.mxu0 %v2502_v1 }
0x26e3   :  { %2218 = vmatpush3.bf16.msra.mxu0 %v2954_v20 }
0x26e4   :  { %2223 = vmatprep.subr.bf16.mxu0 %v2502_v1 }
0x26e6   :  { %2220 = vmatmul.mubr.msk.bf16.vlgmr.msra.gmra.mrb[32].mxu0 %vm153_vm1, %v1445_v41 }
0x26e7   :  { %2224 = vmatpush3.bf16.msra.mxu0 %v2429_v27  ;;  %2227 = vmatprep.mubr.msk.bf16.mxu0 %vm2503_vm0, %v2502_v1 }
0x26e8   :  { %2225 = vmatprep.subr.bf16.mxu0 %v2502_v1 }
0x26eb   :  { %2226 = vmatpush3.bf16.msra.mxu0 %v2430_v3 }
0x27b9   :  { %v1594_v4 = vpop.f32.mrb[32].mxu0 }
0x27ba   :  { %v1601_v0 = vrot.slane %v1594_v4, 1  ;;  %v2221_v6 = vpop.f32.mrb[33].mxu0 }
0x27bb   :  { %v1597_v7 = vpop.f32.mrb[34].mxu0 }
0x27bc   :  { %v1603_v8 = vadd.f32 %v1601_v0, %v2650_v18  ;;  %v2222_v10 = vpop.f32.mrb[35].mxu0 }
0x27be   :  { %2410 = vtanh.f32 %v1603_v8  ;;  %v1943_v2 = vmul.f32 -1.442695, %v1603_v8 }
0x27c0   :  { %2412 = vpow2.f32 %v1943_v2 }
0x27c8   :  { %v2411_v11 = vpop.eup %2410 }
0x27c9   :  { %1616 = vrot.lane.b32.xlu0 %v2411_v11, %s2504_s27 }
0x27ca   :  { %v2413_v13 = vpop.eup %2412 }
0x27cb   :  { %v1607_v14 = vadd.f32 1.0, %v2413_v13 }
0x27cd   :  { %2414 = vrcp.f32 %v1607_v14 }
0x27d7   :  { %v2415_v15 = vpop.eup %2414 }
0x27d8   :  { %v1614_v20 = vmul.f32 %v2415_v15, %v1612_v19 }
0x283b   :  { %v1617_v16 = vpop.permute.xlu0 %1616 }
0x283c   :  { %v1619_v17 = vmul.f32 %v2415_v15, %v1617_v16 }
0x283e   :  { %1621 = vrot.lane.b32.xlu1 %v1619_v17, %s2505_s5 }
0x28b0   :  { %v1622_v21 = vpop.permute.xlu1 %1621 }
0x28b1   :  { %v1624_v18 = vadd.f32 %v1622_v21, %v1614_v20 }
0x28b3   :  { %2416 = vtanh.f32 %v1624_v18  ;;  %v1721_v43 = vrot.slane %v1624_v18, 7 }
0x28bd   :  { %v2417_v22 = vpop.eup %2416 }
0x28be   :  { %1627 = vrot.lane.b32.xlu0 %v2417_v22, %s2504_s27 }
0x2930   :  { %v1628_v23 = vpop.permute.xlu0 %1627 }
0x2931   :  { %v1630_v24 = vmul.f32 %v2415_v15, %v1628_v23 }
0x2933   :  { %v1631_v25 = vpack.c.bf16 %v1630_v24, %v1630_v24  ;;  %v1707_v52 = vrot.slane %v1630_v24, 7 }
0x2935   :  { %v1633_v26 = vshrl.u32 %v1631_v25, 16 }
0x2937   :  { %v1635_v28 = vrot.slane %v1633_v26, 3 }
0x2939   :  { %1636 = vrot.lane.b32.xlu1 %v1635_v28, %s2505_s5 }
0x29ab   :  { %v1637_v38 = vpop.permute.xlu1 %1636 }
0x29ac   :  { %2228 = vmatmul.mubr.msk.bf16.vlgmr.msra.gmra.mrb[28].mxu0 %vm153_vm1, %v1637_v38 }
0x2a7f   :  { %v1675_v9 = vpop.f32.mrb[28].mxu0 }
0x2a80   :  { %v2246_v29 = vadd.f32 %v2431_v47, %v1675_v9  ;;  %v2229_v39 = vpop.f32.mrb[29].mxu0 }
0x2a81   :  { %v1678_v30 = vpop.f32.mrb[30].mxu0 }
0x2a82   :  { %2418 = vtanh.f32 %v2246_v29  ;;  %v2230_v12 = vpop.f32.mrb[31].mxu0  ;;  %v1945_v32 = vmul.f32 -1.442695, %v2246_v29 }
0x2a84   :  { %2420 = vpow2.f32 %v1945_v32 }
0x2a8c   :  { %v2419_v31 = vpop.eup %2418 }
0x2a8d   :  { %1690 = vrot.lane.b32.xlu0 %v2419_v31, %s2504_s27 }
0x2a8e   :  { %v2421_v33 = vpop.eup %2420 }
0x2a8f   :  { %v1684_v34 = vadd.f32 1.0, %v2421_v33 }
0x2a91   :  { %2422 = vrcp.f32 %v1684_v34 }
0x2a9b   :  { %v2423_v35 = vpop.eup %2422 }
0x2a9c   :  { %v1688_v40 = vmul.f32 %v2423_v35, %v2981_v56 }
0x2aff   :  { %v1691_v36 = vpop.permute.xlu0 %1690 }
0x2b00   :  { %v1693_v37 = vmul.f32 %v2423_v35, %v1691_v36 }
0x2b02   :  { %1695 = vrot.lane.b32.xlu1 %v1693_v37, %s2505_s5 }
0x2b74   :  { %v1696_v41 = vpop.permute.xlu1 %1695 }
0x2b75   :  { %v1698_v42 = vadd.f32 %v1696_v41, %v1688_v40 }
0x2b77   :  { %2424 = vtanh.f32 %v1698_v42  ;;  %v1724_v44 = vrot.slane %v1698_v42, 7 }
0x2b79   :  { %v1726_v45 = vsel %vm1712_vm3, %v1721_v43, %v1724_v44 }
0x2b81   :  { %v2425_v48 = vpop.eup %2424 }
0x2b82   :  { %1701 = vrot.lane.b32.xlu0 %v2425_v48, %s2504_s27  ;;  %s2507_s27 = smov [#allocation4]  }
0x2b83   :  { %s1870_s30 = sshll.u32 %s2507_s27, 4  ;;  %s1871_s30 = int_to_ptr.vmem [resolvable:$true] %s1870_s30 }
0x2b84   :  { %s2432_s14 = scalar_lea.vmem %s1871_s30, 32  ;;  %p2437_p1 = scmp.lt.s32.totalorder %s1871_s30, %s1871_s30 }
0x2b85   :  { %p2433_p0 = scmp.ne.s32.totalorder %s1871_s30, %s2432_s14  ;;  %p2438_p2 = scmp.lt.s32.totalorder %s2432_s14, %s2432_s14 }
0x2b87   :  { %p2439_p3 = por %p2438_p2, %p2437_p1 }
0x2b89   :  { %p2440_p4 = pnand %p2439_p3, %p2433_p0 }
0x2bf4   :  { %v1702_v50 = vpop.permute.xlu0 %1701 }
0x2bf5   :  { %v1704_v51 = vmul.f32 %v2423_v35, %v1702_v50 }
0x2bf7   :  { %v1705_v53 = vpack.c.bf16 %v1704_v51, %v1704_v51  ;;  %v1710_v54 = vrot.slane %v1704_v51, 7 }
0x2bf9   :  { %v1750_v55 = vshll.u32 %v1705_v53, 16  ;;  %v1713_v46 = vsel %vm1712_vm3, %v1707_v52, %v1710_v54 }
0x2bfa   :  { %1715 = vrot.lane.b32.xlu0 %v1713_v46, %s2505_s5 }
0x2bfb   :  { %v1752_v56 = vrot.slane %v1750_v55, 5 }
0x2bfd   :  { %v1783_v1 = vsel %vm1782_vm14, %v2992_v62, %v1752_v56 }
0x2bfe   :  { %1796 = vrot.lane.b32.xlu1 %v1783_v1, %s2505_s5 }
0x2c02   :  { %1728 = vrot.lane.b32.xlu1 %v1726_v45, %s2506_s9 }
0x2c6c   :  { %v1716_v57 = vpop.permute.xlu0 %1715 }
0x2c6d   :  { %1719 = vst.msk [vmem:[#allocation4] sm:$0x3] %vm1718_vm15, %v1716_v57 }
0x2c70   :  { %v1797_v58 = vpop.permute.xlu1 %1796 }
0x2c71   :  { %2236 = vmatmul.mubr.msk.bf16.vlgmr.msra.gmra.mrb[32].mxu1 %vm153_vm1, %v1797_v58 }
0x2c74   :  { %v1729_v59 = vpop.permute.xlu1 %1728 }
0x2c75   :  { %1731 = vst.msk [vmem:[#allocation6] sm:$0x3] %vm1718_vm15, %v1729_v59 }
0x2c76   :  { %2443 = shalt.err (!%p2440_p4)
}
0x2c77   :  { %s2444_s16 = scalar_lea.hbm %s3089_s12, 32 }
0x2c78   :  { %p2445_p5 = scmp.ne.s32.totalorder %s3089_s12, %s2444_s16  ;;  %p2448_p6 = scmp.lt.u32.totalorder %s2444_s16, %s3089_s12 }
0x2c7a   :  { %p2450_p7 = pnand %p2448_p6, %p2445_p5 }
0x2c7c   :  { %2453 = shalt.err (!%p2450_p7)
}
0x2c7d   :  { %1873 = dma.vmem_to_hbm [thread:$0]  %s1871_s30, 32, %s3089_s12, [#allocation5]  }
0x2c7e   :  { %s2508_s7 = smov [#allocation6]  }
0x2c7f   :  { %s1880_s22 = sshll.u32 %s2508_s7, 4  ;;  %s1881_s22 = int_to_ptr.vmem [resolvable:$true] %s1880_s22 }
0x2c80   :  { %s2454_s23 = scalar_lea.vmem %s1881_s22, 32  ;;  %p2459_p9 = scmp.lt.s32.totalorder %s1881_s22, %s1881_s22 }
0x2c81   :  { %p2455_p8 = scmp.ne.s32.totalorder %s1881_s22, %s2454_s23  ;;  %p2460_p10 = scmp.lt.s32.totalorder %s2454_s23, %s2454_s23 }
0x2c83   :  { %p2461_p11 = por %p2460_p10, %p2459_p9 }
0x2c85   :  { %p2462_p12 = pnand %p2461_p11, %p2455_p8 }
0x2c87   :  { %2465 = shalt.err (!%p2462_p12)
}
0x2c88   :  { %s2466_s3 = scalar_lea.hbm %s3090_s13, 32 }
0x2c89   :  { %p2467_p13 = scmp.ne.s32.totalorder %s3090_s13, %s2466_s3  ;;  %p2470_p0 = scmp.lt.u32.totalorder %s2466_s3, %s3090_s13 }
0x2c8b   :  { %p2472_p1 = pnand %p2470_p0, %p2467_p13 }
0x2c8d   :  { %2475 = shalt.err (!%p2472_p1)
}
0x2c8e   :  { %1883 = dma.vmem_to_hbm [thread:$0]  %s1881_s22, 32, %s3090_s13, [#allocation5]   ;;  %v1946_v60 = vld [vmem:[%s3087_s10] ss:$0 sm:$0xff] }
0x2c8f   :  { %s2509_s29 = smov [#allocation2]  }
0x2c90   :  { %s1860_s9 = sshll.u32 %s2509_s29, 4  ;;  %s1861_s9 = int_to_ptr.vmem [resolvable:$true] %s1860_s9 }
0x2c91   :  { %s2476_s27 = scalar_lea.vmem %s1861_s9, 128  ;;  %p2481_p3 = scmp.lt.s32.totalorder %s1861_s9, %s1861_s9 }
0x2c92   :  { %p2477_p2 = scmp.ne.s32.totalorder %s1861_s9, %s2476_s27  ;;  %p2482_p4 = scmp.lt.s32.totalorder %s2476_s27, %s2476_s27 }
0x2c94   :  { %p2483_p5 = por %p2482_p4, %p2481_p3 }
0x2c96   :  { %p2484_p6 = pnand %p2483_p5, %p2477_p2 }
0x2d44   :  { %v1847_v61 = vpop.f32.mrb[32].mxu1 }
0x2d45   :  { %v1848_v62 = vadd.f32 %v1946_v60, %v1847_v61  ;;  %v2237_v63 = vpop.f32.mrb[33].mxu1 }
0x2d46   :  { %v1850_v27 = vpop.f32.mrb[34].mxu1 }
0x2d47   :  { %1853 = vst [vmem:[#allocation2] sm:$0xff] %v1848_v62  ;;  %v2238_v3 = vpop.f32.mrb[35].mxu1 }
0x2d48   :  { %2487 = shalt.err (!%p2484_p6)
}
0x2d49   :  { %s2488_s10 = scalar_lea.hbm %s3088_s11, 128 }
0x2d4a   :  { %p2489_p7 = scmp.ne.s32.totalorder %s3088_s11, %s2488_s10  ;;  %p2492_p8 = scmp.lt.u32.totalorder %s2488_s10, %s3088_s11 }
0x2d4c   :  { %p2494_p9 = pnand %p2492_p8, %p2489_p7 }
0x2d4e   :  { %2497 = shalt.err (!%p2494_p9)
}
0x2d4f   :  { %1863 = dma.vmem_to_hbm [thread:$0]  %s1861_s9, 128, %s3088_s11, [#allocation3]  }
0x2d50   :  { %2498 = dma.done.wait [#allocation3], 128  }
0x2d51   :  { %2499 = vsyncadd [#allocation3], 4294967168 }
0x2d52   :  { %2500 = dma.done.wait [#allocation5], 64  }
0x2d53   :  { %2501 = vsyncadd [#allocation5], 4294967232 }
0x2d54   :  { %1893 = vsyncpa [#allocation3], 1 }
0x2d55   :  { %1894 = vsyncpa [#allocation5], 1 }

</bundles_post_ra>
